<compile_context>
chip_gen: v5e
topology: v5e:2x2
jax: 0.10.0
libtpu: 0.0.40
codegen_flags: <defaults>
</compile_context>

<pallas_src>
import jax
import jax.numpy as jnp
from jax.experimental import pallas as pl
from jax.experimental.pallas import tpu as pltpu


# ------------------------------ fused kernel --------------------------------
def _make_fused_lstm_kernel(T, B, H, num_layers):
    """Builds the fused (all LSTM layers + classifier) kernel body.

    B here is the *padded* batch (sublane multiple).
    """

    def _lstm_step(gates, c):
        # PyTorch gate order: input, forget, cell(g), output.
        # NOTE: at H=32 these slices are sub-vreg lane extracts; for
        # production sizes keep H a multiple of 128 so they are lane-aligned.
        i = jax.nn.sigmoid(gates[:, 0 * H:1 * H])
        f = jax.nn.sigmoid(gates[:, 1 * H:2 * H])
        g = jnp.tanh(gates[:, 2 * H:3 * H])
        o = jax.nn.sigmoid(gates[:, 3 * H:4 * H])
        c = f * c + i * g
        h = o * jnp.tanh(c)
        return h, c

    def kernel(*refs):
        it = iter(refs)
        proj0_ref = next(it)                       # (T*B, 4H) = x @ W_ih0 + b0
        whh0_ref = next(it)                        # (H, 4H)
        upper = [(next(it), next(it), next(it))    # (w_ih, w_hh, b) per layer>=1
                 for _ in range(num_layers - 1)]
        fcw_ref = next(it)                         # (1, H)
        fcb_ref = next(it)                         # (1, 1)
        out_ref = next(it)                         # (B, 1)
        if num_layers > 1:
            seq_ref = next(it)                     # (T*B, H)  VMEM scratch
            proj_ref = next(it)                    # (T*B, 4H) VMEM scratch

        # -------- layer 0: input projection hoisted out of the kernel -------
        w_hh = whh0_ref[...]
        h = jnp.zeros((B, H), jnp.float32)
        c = jnp.zeros((B, H), jnp.float32)
        for t in range(T):
            rows = pl.ds(t * B, B)                 # static offset, zero cost
            gates = proj0_ref[rows, :] + jnp.dot(
                h, w_hh, preferred_element_type=jnp.float32)
            h, c = _lstm_step(gates, c)
            if num_layers > 1:
                seq_ref[rows, :] = h

        # -------- layers 1..L-1 ----------------------------------------------
        for l in range(1, num_layers):
            wih_ref, whh_ref, b_ref = upper[l - 1]
            # Hoisted input projection for this layer: ONE well-shaped MXU
            # matmul (M = T*B) with the bias pre-added, replacing T tiny
            # (M = B) matmuls + T bias broadcasts on the serial chain.
            proj_ref[...] = (
                jnp.dot(seq_ref[...], wih_ref[...],
                        preferred_element_type=jnp.float32)
                + b_ref[...])
            w_hh = whh_ref[...]
            h = jnp.zeros((B, H), jnp.float32)
            c = jnp.zeros((B, H), jnp.float32)
            last_layer = l == num_layers - 1
            for t in range(T):
                rows = pl.ds(t * B, B)
                gates = proj_ref[rows, :] + jnp.dot(
                    h, w_hh, preferred_element_type=jnp.float32)
                h, c = _lstm_step(gates, c)
                if not last_layer:
                    seq_ref[rows, :] = h           # overwrite for next layer

        # -------- classifier: Dropout(eval)=identity, Linear(H,1), Sigmoid --
        logits = (jnp.sum(h * fcw_ref[...], axis=-1, keepdims=True)
                  + fcb_ref[...])
        out_ref[...] = jax.nn.sigmoid(logits)

    return kernel


# --------------------------------- wrapper ----------------------------------
def lstm_net_forward(token_ids, params):
    """token_ids: (B, T) int32 -> (B, 1) f32 probabilities."""
    B, T = token_ids.shape
    emb = params["embedding"]
    lstm = params["lstm"]
    H = lstm[0]["w_hh"].shape[0]
    L = len(lstm)

    # Embedding gather directly into time-major (T, B, E) layout (XLA glue).
    x = jnp.take(emb, token_ids.T, axis=0)                       # (T, B, E)

    # Hoisted layer-0 input projection: one parallel (T*B,E) x (E,4H) matmul.
    # Default MXU precision, consistent with the in-kernel dots and reference.
    proj0 = jnp.einsum("tbe,eg->tbg", x, lstm[0]["w_ih"]) + lstm[0]["b"]

    # Pad batch to a sublane multiple (>= 8); padded rows are discarded.
    B_pad = max(8, ((B + 7) // 8) * 8)
    if B_pad != B:
        proj0 = jnp.pad(proj0, ((0, 0), (0, B_pad - B), (0, 0)))
    proj0 = proj0.reshape(T * B_pad, 4 * H)                      # lane-dense 2D

    inputs = [proj0, lstm[0]["w_hh"]]
    in_specs = [
        pl.BlockSpec((T * B_pad, 4 * H), lambda i: (0, 0)),
        pl.BlockSpec((H, 4 * H), lambda i: (0, 0)),
    ]
    for l in range(1, L):
        inputs += [lstm[l]["w_ih"], lstm[l]["w_hh"], lstm[l]["b"]]
        in_specs += [
            pl.BlockSpec((H, 4 * H), lambda i: (0, 0)),
            pl.BlockSpec((H, 4 * H), lambda i: (0, 0)),
            pl.BlockSpec((1, 4 * H), lambda i: (0, 0)),
        ]
    inputs += [params["fc_w"], params["fc_b"]]
    in_specs += [
        pl.BlockSpec((1, H), lambda i: (0, 0)),
        pl.BlockSpec((1, 1), lambda i: (0, 0)),
    ]

    # Scratch only needed when there is an upper layer to feed.
    scratch_shapes = []
    if L > 1:
        scratch_shapes = [
            pltpu.VMEM((T * B_pad, H), jnp.float32),       # inter-layer seq
            pltpu.VMEM((T * B_pad, 4 * H), jnp.float32),   # hoisted projection
        ]

    # Explicit VMEM limit sized to the resident set (x2 for default input
    # double-buffering) with headroom, capped so it is legal on v7x.
    input_bytes = sum(int(a.size) * a.dtype.itemsize for a in inputs)
    scratch_bytes = (T * B_pad * 5 * H * 4) if L > 1 else 0
    vmem_limit = int(min(48 << 20,
                         max(16 << 20, 2 * input_bytes + scratch_bytes
                             + (4 << 20))))

    out = pl.pallas_call(
        _make_fused_lstm_kernel(T, B_pad, H, L),
        out_shape=jax.ShapeDtypeStruct((B_pad, 1), jnp.float32),
        grid_spec=pltpu.PrefetchScalarGridSpec(
            num_scalar_prefetch=0,
            grid=(1,),
            in_specs=in_specs,
            out_specs=pl.BlockSpec((B_pad, 1), lambda i: (0, 0)),
            scratch_shapes=scratch_shapes,
        ),
        compiler_params=pltpu.CompilerParams(
            dimension_semantics=("arbitrary",),
            vmem_limit_bytes=vmem_limit),
    )(*inputs)
    return out[:B]


# ---------------------------- pure-JAX reference -----------------------------
def lstm_net_reference(token_ids, params):
    """Non-Pallas reference with identical math / precision (for validation)."""
    B, T = token_ids.shape
    H = params["lstm"][0]["w_hh"].shape[0]
    seq = jnp.take(params["embedding"], token_ids.T, axis=0)     # (T, B, E)
    h = jnp.zeros((B, H), jnp.float32)
    for layer in params["lstm"]:
        h = jnp.zeros((B, H), jnp.float32)
        c = jnp.zeros((B, H), jnp.float32)
        outs = []
        for t in range(T):
            gates = (jnp.dot(seq[t], layer["w_ih"])
                     + jnp.dot(h, layer["w_hh"])
                     + layer["b"])
            i = jax.nn.sigmoid(gates[:, 0 * H:1 * H])
            f = jax.nn.sigmoid(gates[:, 1 * H:2 * H])
            g = jnp.tanh(gates[:, 2 * H:3 * H])
            o = jax.nn.sigmoid(gates[:, 3 * H:4 * H])
            c = f * c + i * g
            h = o * jnp.tanh(c)
            outs.append(h)
        seq = jnp.stack(outs, axis=0)
    logits = jnp.sum(h * params["fc_w"], axis=-1, keepdims=True) + params["fc_b"]
    return jax.nn.sigmoid(logits)


# --------------------------------- params ------------------------------------
def init_params(key, vocab, embed_dim, hidden_dim, num_layers):
    keys = jax.random.split(key, 2 + 4 * num_layers)
    k_emb, k_fc = keys[0], keys[1]
    scale = 1.0 / jnp.sqrt(hidden_dim)

    params = {
        "embedding": jax.random.normal(k_emb, (vocab, embed_dim), jnp.float32),
        "lstm": [],
        # PyTorch nn.Linear(H, 1).weight is (1, H); stored the same way here.
        "fc_w": jax.random.uniform(k_fc, (1, hidden_dim), jnp.float32,
                                   -scale, scale),
        "fc_b": jnp.zeros((1, 1), jnp.float32),
    }
    for l in range(num_layers):
        d_in = embed_dim if l == 0 else hidden_dim
        k0, k1, k2, k3 = keys[2 + 4 * l: 2 + 4 * (l + 1)]
        # NOTE: stored pre-transposed vs. PyTorch ((D_in,4H)/(H,4H) instead of
        # (4H,D_in)/(4H,H)); transpose when loading real checkpoints.
        w_ih = jax.random.uniform(k0, (d_in, 4 * hidden_dim), jnp.float32,
                                  -scale, scale)
        w_hh = jax.random.uniform(k1, (hidden_dim, 4 * hidden_dim), jnp.float32,
                                  -scale, scale)
        b_ih = jax.random.uniform(k2, (4 * hidden_dim,), jnp.float32,
                                  -scale, scale)
        b_hh = jax.random.uniform(k3, (4 * hidden_dim,), jnp.float32,
                                  -scale, scale)
        params["lstm"].append({
            "w_ih": w_ih,
            "w_hh": w_hh,
            "b": (b_ih + b_hh).reshape(1, 4 * hidden_dim),
        })
    return params


if __name__ == "__main__":
    BATCH = 2
    SEQ = 8
    VOCAB = 32
    EMBED_DIM = 16
    HIDDEN_DIM = 32
    NUM_LAYERS = 2

    key = jax.random.PRNGKey(0)
    k_params, k_tok = jax.random.split(key)
    params = init_params(k_params, VOCAB, EMBED_DIM, HIDDEN_DIM, NUM_LAYERS)
    token_ids = jax.random.randint(k_tok, (BATCH, SEQ), 0, VOCAB, jnp.int32)

    out = jax.jit(lstm_net_forward)(token_ids, params)
    out = jax.block_until_ready(out)

    assert out.shape == (BATCH, 1)
    assert bool(jnp.all((out >= 0.0) & (out <= 1.0)))

    ref = lstm_net_reference(token_ids, params)
    assert bool(jnp.all(jnp.abs(out - ref) < 1e-2))

    print("KERNEL_OK")
</pallas_src>

<mosaic_0001>
module attributes {stable_mosaic.version = 11 : i64} {
  func.func @kernel(%arg0: i32, %arg1: memref<64x128xf32, #tpu.memory_space<vmem>>, %arg2: memref<32x128xf32, #tpu.memory_space<vmem>>, %arg3: memref<32x128xf32, #tpu.memory_space<vmem>>, %arg4: memref<32x128xf32, #tpu.memory_space<vmem>>, %arg5: memref<1x128xf32, #tpu.memory_space<vmem>>, %arg6: memref<1x32xf32, #tpu.memory_space<vmem>>, %arg7: memref<1x1xf32, #tpu.memory_space<vmem>>, %arg8: memref<8x1xf32, #tpu.memory_space<vmem>>, %arg9: memref<64x32xf32, #tpu.memory_space<vmem>>, %arg10: memref<64x128xf32, #tpu.memory_space<vmem>>) attributes {dimension_semantics = [#tpu.dimension_semantics<arbitrary>], iteration_bounds = array<i64: 1>, scalar_prefetch = 0 : i64, scratch_operands = 2 : i64, tpu.core_type = #tpu.core_type<tc>, window_params = [{pipeline_mode = #tpu.pipeline_mode<synchronous>, transform_indices = @transform_0, window_bounds = array<i64: 64, 128>}, {pipeline_mode = #tpu.pipeline_mode<synchronous>, transform_indices = @transform_1, window_bounds = array<i64: 32, 128>}, {pipeline_mode = #tpu.pipeline_mode<synchronous>, transform_indices = @transform_2, window_bounds = array<i64: 32, 128>}, {pipeline_mode = #tpu.pipeline_mode<synchronous>, transform_indices = @transform_3, window_bounds = array<i64: 32, 128>}, {pipeline_mode = #tpu.pipeline_mode<synchronous>, transform_indices = @transform_4, window_bounds = array<i64: 1, 128>}, {pipeline_mode = #tpu.pipeline_mode<synchronous>, transform_indices = @transform_5, window_bounds = array<i64: 1, 32>}, {pipeline_mode = #tpu.pipeline_mode<synchronous>, transform_indices = @transform_6, window_bounds = array<i64: 1, 1>}, {pipeline_mode = #tpu.pipeline_mode<synchronous>, transform_indices = @transform_7, window_bounds = array<i64: 8, 1>}]} {
    %c0 = arith.constant 0 : index
    %c0_0 = arith.constant 0 : index
    %0 = vector.load %arg2[%c0, %c0_0] : memref<32x128xf32, #tpu.memory_space<vmem>>, vector<32x128xf32>
    %cst = arith.constant 0.000000e+00 : f32
    %1 = vector.broadcast %cst : f32 to vector<8x32xf32>
    %cst_1 = arith.constant 0.000000e+00 : f32
    %2 = vector.broadcast %cst_1 : f32 to vector<8x32xf32>
    %c0_2 = arith.constant 0 : index
    %c0_3 = arith.constant 0 : index
    %3 = vector.load %arg1[%c0_2, %c0_3] : memref<64x128xf32, #tpu.memory_space<vmem>>, vector<8x128xf32>
    %cst_4 = arith.constant dense<0.000000e+00> : vector<8x128xf32>
    %4 = tpu.matmul %1, %0, %cst_4 {dimension_numbers = #tpu.dot_dimension_numbers<[1], [0], [0], [1], [0, 0, 1, 1], [], []>} : vector<8x32xf32>, vector<32x128xf32>, vector<8x128xf32> -> vector<8x128xf32>
    %5 = arith.addf %3, %4 : vector<8x128xf32>
    %6 = vector.extract_strided_slice %5 {offsets = [0, 0], sizes = [8, 32], strides = [1, 1]} : vector<8x128xf32> to vector<8x32xf32>
    %7 = arith.negf %6 : vector<8x32xf32>
    %8 = math.exp %7 : vector<8x32xf32>
    %cst_5 = arith.constant 1.000000e+00 : f32
    %9 = vector.broadcast %cst_5 : f32 to vector<8x32xf32>
    %10 = arith.addf %9, %8 : vector<8x32xf32>
    %11 = arith.divf %9, %10 : vector<8x32xf32>
    %12 = vector.extract_strided_slice %5 {offsets = [0, 32], sizes = [8, 32], strides = [1, 1]} : vector<8x128xf32> to vector<8x32xf32>
    %13 = arith.negf %12 : vector<8x32xf32>
    %14 = math.exp %13 : vector<8x32xf32>
    %cst_6 = arith.constant 1.000000e+00 : f32
    %15 = vector.broadcast %cst_6 : f32 to vector<8x32xf32>
    %16 = arith.addf %15, %14 : vector<8x32xf32>
    %17 = arith.divf %15, %16 : vector<8x32xf32>
    %18 = vector.extract_strided_slice %5 {offsets = [0, 64], sizes = [8, 32], strides = [1, 1]} : vector<8x128xf32> to vector<8x32xf32>
    %19 = math.tanh %18 : vector<8x32xf32>
    %20 = vector.extract_strided_slice %5 {offsets = [0, 96], sizes = [8, 32], strides = [1, 1]} : vector<8x128xf32> to vector<8x32xf32>
    %21 = arith.negf %20 : vector<8x32xf32>
    %22 = math.exp %21 : vector<8x32xf32>
    %cst_7 = arith.constant 1.000000e+00 : f32
    %23 = vector.broadcast %cst_7 : f32 to vector<8x32xf32>
    %24 = arith.addf %23, %22 : vector<8x32xf32>
    %25 = arith.divf %23, %24 : vector<8x32xf32>
    %26 = arith.mulf %17, %2 : vector<8x32xf32>
    %27 = arith.mulf %11, %19 : vector<8x32xf32>
    %28 = arith.addf %26, %27 : vector<8x32xf32>
    %29 = math.tanh %28 : vector<8x32xf32>
    %30 = arith.mulf %25, %29 : vector<8x32xf32>
    %c0_8 = arith.constant 0 : index
    %c0_9 = arith.constant 0 : index
    %31 = vector.load %arg9[%c0_8, %c0_9] : memref<64x32xf32, #tpu.memory_space<vmem>>, vector<8x32xf32>
    tpu.vector_store %arg9[%c0_8, %c0_9], %30 {strides = array<i32>} : memref<64x32xf32, #tpu.memory_space<vmem>>, vector<8x32xf32>,
    %c8 = arith.constant 8 : index
    %c0_10 = arith.constant 0 : index
    %32 = vector.load %arg1[%c8, %c0_10] : memref<64x128xf32, #tpu.memory_space<vmem>>, vector<8x128xf32>
    %cst_11 = arith.constant dense<0.000000e+00> : vector<8x128xf32>
    %33 = tpu.matmul %30, %0, %cst_11 {dimension_numbers = #tpu.dot_dimension_numbers<[1], [0], [0], [1], [0, 0, 1, 1], [], []>} : vector<8x32xf32>, vector<32x128xf32>, vector<8x128xf32> -> vector<8x128xf32>
    %34 = arith.addf %32, %33 : vector<8x128xf32>
    %35 = vector.extract_strided_slice %34 {offsets = [0, 0], sizes = [8, 32], strides = [1, 1]} : vector<8x128xf32> to vector<8x32xf32>
    %36 = arith.negf %35 : vector<8x32xf32>
    %37 = math.exp %36 : vector<8x32xf32>
    %cst_12 = arith.constant 1.000000e+00 : f32
    %38 = vector.broadcast %cst_12 : f32 to vector<8x32xf32>
    %39 = arith.addf %38, %37 : vector<8x32xf32>
    %40 = arith.divf %38, %39 : vector<8x32xf32>
    %41 = vector.extract_strided_slice %34 {offsets = [0, 32], sizes = [8, 32], strides = [1, 1]} : vector<8x128xf32> to vector<8x32xf32>
    %42 = arith.negf %41 : vector<8x32xf32>
    %43 = math.exp %42 : vector<8x32xf32>
    %cst_13 = arith.constant 1.000000e+00 : f32
    %44 = vector.broadcast %cst_13 : f32 to vector<8x32xf32>
    %45 = arith.addf %44, %43 : vector<8x32xf32>
    %46 = arith.divf %44, %45 : vector<8x32xf32>
    %47 = vector.extract_strided_slice %34 {offsets = [0, 64], sizes = [8, 32], strides = [1, 1]} : vector<8x128xf32> to vector<8x32xf32>
    %48 = math.tanh %47 : vector<8x32xf32>
    %49 = vector.extract_strided_slice %34 {offsets = [0, 96], sizes = [8, 32], strides = [1, 1]} : vector<8x128xf32> to vector<8x32xf32>
    %50 = arith.negf %49 : vector<8x32xf32>
    %51 = math.exp %50 : vector<8x32xf32>
    %cst_14 = arith.constant 1.000000e+00 : f32
    %52 = vector.broadcast %cst_14 : f32 to vector<8x32xf32>
    %53 = arith.addf %52, %51 : vector<8x32xf32>
    %54 = arith.divf %52, %53 : vector<8x32xf32>
    %55 = arith.mulf %46, %28 : vector<8x32xf32>
    %56 = arith.mulf %40, %48 : vector<8x32xf32>
    %57 = arith.addf %55, %56 : vector<8x32xf32>
    %58 = math.tanh %57 : vector<8x32xf32>
    %59 = arith.mulf %54, %58 : vector<8x32xf32>
    %c8_15 = arith.constant 8 : index
    %c0_16 = arith.constant 0 : index
    %60 = vector.load %arg9[%c8_15, %c0_16] : memref<64x32xf32, #tpu.memory_space<vmem>>, vector<8x32xf32>
    tpu.vector_store %arg9[%c8_15, %c0_16], %59 {strides = array<i32>} : memref<64x32xf32, #tpu.memory_space<vmem>>, vector<8x32xf32>,
    %c16 = arith.constant 16 : index
    %c0_17 = arith.constant 0 : index
    %61 = vector.load %arg1[%c16, %c0_17] : memref<64x128xf32, #tpu.memory_space<vmem>>, vector<8x128xf32>
    %cst_18 = arith.constant dense<0.000000e+00> : vector<8x128xf32>
    %62 = tpu.matmul %59, %0, %cst_18 {dimension_numbers = #tpu.dot_dimension_numbers<[1], [0], [0], [1], [0, 0, 1, 1], [], []>} : vector<8x32xf32>, vector<32x128xf32>, vector<8x128xf32> -> vector<8x128xf32>
    %63 = arith.addf %61, %62 : vector<8x128xf32>
    %64 = vector.extract_strided_slice %63 {offsets = [0, 0], sizes = [8, 32], strides = [1, 1]} : vector<8x128xf32> to vector<8x32xf32>
    %65 = arith.negf %64 : vector<8x32xf32>
    %66 = math.exp %65 : vector<8x32xf32>
    %cst_19 = arith.constant 1.000000e+00 : f32
    %67 = vector.broadcast %cst_19 : f32 to vector<8x32xf32>
    %68 = arith.addf %67, %66 : vector<8x32xf32>
    %69 = arith.divf %67, %68 : vector<8x32xf32>
    %70 = vector.extract_strided_slice %63 {offsets = [0, 32], sizes = [8, 32], strides = [1, 1]} : vector<8x128xf32> to vector<8x32xf32>
    %71 = arith.negf %70 : vector<8x32xf32>
    %72 = math.exp %71 : vector<8x32xf32>
    %cst_20 = arith.constant 1.000000e+00 : f32
    %73 = vector.broadcast %cst_20 : f32 to vector<8x32xf32>
    %74 = arith.addf %73, %72 : vector<8x32xf32>
    %75 = arith.divf %73, %74 : vector<8x32xf32>
    %76 = vector.extract_strided_slice %63 {offsets = [0, 64], sizes = [8, 32], strides = [1, 1]} : vector<8x128xf32> to vector<8x32xf32>
    %77 = math.tanh %76 : vector<8x32xf32>
    %78 = vector.extract_strided_slice %63 {offsets = [0, 96], sizes = [8, 32], strides = [1, 1]} : vector<8x128xf32> to vector<8x32xf32>
    %79 = arith.negf %78 : vector<8x32xf32>
    %80 = math.exp %79 : vector<8x32xf32>
    %cst_21 = arith.constant 1.000000e+00 : f32
    %81 = vector.broadcast %cst_21 : f32 to vector<8x32xf32>
    %82 = arith.addf %81, %80 : vector<8x32xf32>
    %83 = arith.divf %81, %82 : vector<8x32xf32>
    %84 = arith.mulf %75, %57 : vector<8x32xf32>
    %85 = arith.mulf %69, %77 : vector<8x32xf32>
    %86 = arith.addf %84, %85 : vector<8x32xf32>
    %87 = math.tanh %86 : vector<8x32xf32>
    %88 = arith.mulf %83, %87 : vector<8x32xf32>
    %c16_22 = arith.constant 16 : index
    %c0_23 = arith.constant 0 : index
    %89 = vector.load %arg9[%c16_22, %c0_23] : memref<64x32xf32, #tpu.memory_space<vmem>>, vector<8x32xf32>
    tpu.vector_store %arg9[%c16_22, %c0_23], %88 {strides = array<i32>} : memref<64x32xf32, #tpu.memory_space<vmem>>, vector<8x32xf32>,
    %c24 = arith.constant 24 : index
    %c0_24 = arith.constant 0 : index
    %90 = vector.load %arg1[%c24, %c0_24] : memref<64x128xf32, #tpu.memory_space<vmem>>, vector<8x128xf32>
    %cst_25 = arith.constant dense<0.000000e+00> : vector<8x128xf32>
    %91 = tpu.matmul %88, %0, %cst_25 {dimension_numbers = #tpu.dot_dimension_numbers<[1], [0], [0], [1], [0, 0, 1, 1], [], []>} : vector<8x32xf32>, vector<32x128xf32>, vector<8x128xf32> -> vector<8x128xf32>
    %92 = arith.addf %90, %91 : vector<8x128xf32>
    %93 = vector.extract_strided_slice %92 {offsets = [0, 0], sizes = [8, 32], strides = [1, 1]} : vector<8x128xf32> to vector<8x32xf32>
    %94 = arith.negf %93 : vector<8x32xf32>
    %95 = math.exp %94 : vector<8x32xf32>
    %cst_26 = arith.constant 1.000000e+00 : f32
    %96 = vector.broadcast %cst_26 : f32 to vector<8x32xf32>
    %97 = arith.addf %96, %95 : vector<8x32xf32>
    %98 = arith.divf %96, %97 : vector<8x32xf32>
    %99 = vector.extract_strided_slice %92 {offsets = [0, 32], sizes = [8, 32], strides = [1, 1]} : vector<8x128xf32> to vector<8x32xf32>
    %100 = arith.negf %99 : vector<8x32xf32>
    %101 = math.exp %100 : vector<8x32xf32>
    %cst_27 = arith.constant 1.000000e+00 : f32
    %102 = vector.broadcast %cst_27 : f32 to vector<8x32xf32>
    %103 = arith.addf %102, %101 : vector<8x32xf32>
    %104 = arith.divf %102, %103 : vector<8x32xf32>
    %105 = vector.extract_strided_slice %92 {offsets = [0, 64], sizes = [8, 32], strides = [1, 1]} : vector<8x128xf32> to vector<8x32xf32>
    %106 = math.tanh %105 : vector<8x32xf32>
    %107 = vector.extract_strided_slice %92 {offsets = [0, 96], sizes = [8, 32], strides = [1, 1]} : vector<8x128xf32> to vector<8x32xf32>
    %108 = arith.negf %107 : vector<8x32xf32>
    %109 = math.exp %108 : vector<8x32xf32>
    %cst_28 = arith.constant 1.000000e+00 : f32
    %110 = vector.broadcast %cst_28 : f32 to vector<8x32xf32>
    %111 = arith.addf %110, %109 : vector<8x32xf32>
    %112 = arith.divf %110, %111 : vector<8x32xf32>
    %113 = arith.mulf %104, %86 : vector<8x32xf32>
    %114 = arith.mulf %98, %106 : vector<8x32xf32>
    %115 = arith.addf %113, %114 : vector<8x32xf32>
    %116 = math.tanh %115 : vector<8x32xf32>
    %117 = arith.mulf %112, %116 : vector<8x32xf32>
    %c24_29 = arith.constant 24 : index
    %c0_30 = arith.constant 0 : index
    %118 = vector.load %arg9[%c24_29, %c0_30] : memref<64x32xf32, #tpu.memory_space<vmem>>, vector<8x32xf32>
    tpu.vector_store %arg9[%c24_29, %c0_30], %117 {strides = array<i32>} : memref<64x32xf32, #tpu.memory_space<vmem>>, vector<8x32xf32>,
    %c32 = arith.constant 32 : index
    %c0_31 = arith.constant 0 : index
    %119 = vector.load %arg1[%c32, %c0_31] : memref<64x128xf32, #tpu.memory_space<vmem>>, vector<8x128xf32>
    %cst_32 = arith.constant dense<0.000000e+00> : vector<8x128xf32>
    %120 = tpu.matmul %117, %0, %cst_32 {dimension_numbers = #tpu.dot_dimension_numbers<[1], [0], [0], [1], [0, 0, 1, 1], [], []>} : vector<8x32xf32>, vector<32x128xf32>, vector<8x128xf32> -> vector<8x128xf32>
    %121 = arith.addf %119, %120 : vector<8x128xf32>
    %122 = vector.extract_strided_slice %121 {offsets = [0, 0], sizes = [8, 32], strides = [1, 1]} : vector<8x128xf32> to vector<8x32xf32>
    %123 = arith.negf %122 : vector<8x32xf32>
    %124 = math.exp %123 : vector<8x32xf32>
    %cst_33 = arith.constant 1.000000e+00 : f32
    %125 = vector.broadcast %cst_33 : f32 to vector<8x32xf32>
    %126 = arith.addf %125, %124 : vector<8x32xf32>
    %127 = arith.divf %125, %126 : vector<8x32xf32>
    %128 = vector.extract_strided_slice %121 {offsets = [0, 32], sizes = [8, 32], strides = [1, 1]} : vector<8x128xf32> to vector<8x32xf32>
    %129 = arith.negf %128 : vector<8x32xf32>
    %130 = math.exp %129 : vector<8x32xf32>
    %cst_34 = arith.constant 1.000000e+00 : f32
    %131 = vector.broadcast %cst_34 : f32 to vector<8x32xf32>
    %132 = arith.addf %131, %130 : vector<8x32xf32>
    %133 = arith.divf %131, %132 : vector<8x32xf32>
    %134 = vector.extract_strided_slice %121 {offsets = [0, 64], sizes = [8, 32], strides = [1, 1]} : vector<8x128xf32> to vector<8x32xf32>
    %135 = math.tanh %134 : vector<8x32xf32>
    %136 = vector.extract_strided_slice %121 {offsets = [0, 96], sizes = [8, 32], strides = [1, 1]} : vector<8x128xf32> to vector<8x32xf32>
    %137 = arith.negf %136 : vector<8x32xf32>
    %138 = math.exp %137 : vector<8x32xf32>
    %cst_35 = arith.constant 1.000000e+00 : f32
    %139 = vector.broadcast %cst_35 : f32 to vector<8x32xf32>
    %140 = arith.addf %139, %138 : vector<8x32xf32>
    %141 = arith.divf %139, %140 : vector<8x32xf32>
    %142 = arith.mulf %133, %115 : vector<8x32xf32>
    %143 = arith.mulf %127, %135 : vector<8x32xf32>
    %144 = arith.addf %142, %143 : vector<8x32xf32>
    %145 = math.tanh %144 : vector<8x32xf32>
    %146 = arith.mulf %141, %145 : vector<8x32xf32>
    %c32_36 = arith.constant 32 : index
    %c0_37 = arith.constant 0 : index
    %147 = vector.load %arg9[%c32_36, %c0_37] : memref<64x32xf32, #tpu.memory_space<vmem>>, vector<8x32xf32>
    tpu.vector_store %arg9[%c32_36, %c0_37], %146 {strides = array<i32>} : memref<64x32xf32, #tpu.memory_space<vmem>>, vector<8x32xf32>,
    %c40 = arith.constant 40 : index
    %c0_38 = arith.constant 0 : index
    %148 = vector.load %arg1[%c40, %c0_38] : memref<64x128xf32, #tpu.memory_space<vmem>>, vector<8x128xf32>
    %cst_39 = arith.constant dense<0.000000e+00> : vector<8x128xf32>
    %149 = tpu.matmul %146, %0, %cst_39 {dimension_numbers = #tpu.dot_dimension_numbers<[1], [0], [0], [1], [0, 0, 1, 1], [], []>} : vector<8x32xf32>, vector<32x128xf32>, vector<8x128xf32> -> vector<8x128xf32>
    %150 = arith.addf %148, %149 : vector<8x128xf32>
    %151 = vector.extract_strided_slice %150 {offsets = [0, 0], sizes = [8, 32], strides = [1, 1]} : vector<8x128xf32> to vector<8x32xf32>
    %152 = arith.negf %151 : vector<8x32xf32>
    %153 = math.exp %152 : vector<8x32xf32>
    %cst_40 = arith.constant 1.000000e+00 : f32
    %154 = vector.broadcast %cst_40 : f32 to vector<8x32xf32>
    %155 = arith.addf %154, %153 : vector<8x32xf32>
    %156 = arith.divf %154, %155 : vector<8x32xf32>
    %157 = vector.extract_strided_slice %150 {offsets = [0, 32], sizes = [8, 32], strides = [1, 1]} : vector<8x128xf32> to vector<8x32xf32>
    %158 = arith.negf %157 : vector<8x32xf32>
    %159 = math.exp %158 : vector<8x32xf32>
    %cst_41 = arith.constant 1.000000e+00 : f32
    %160 = vector.broadcast %cst_41 : f32 to vector<8x32xf32>
    %161 = arith.addf %160, %159 : vector<8x32xf32>
    %162 = arith.divf %160, %161 : vector<8x32xf32>
    %163 = vector.extract_strided_slice %150 {offsets = [0, 64], sizes = [8, 32], strides = [1, 1]} : vector<8x128xf32> to vector<8x32xf32>
    %164 = math.tanh %163 : vector<8x32xf32>
    %165 = vector.extract_strided_slice %150 {offsets = [0, 96], sizes = [8, 32], strides = [1, 1]} : vector<8x128xf32> to vector<8x32xf32>
    %166 = arith.negf %165 : vector<8x32xf32>
    %167 = math.exp %166 : vector<8x32xf32>
    %cst_42 = arith.constant 1.000000e+00 : f32
    %168 = vector.broadcast %cst_42 : f32 to vector<8x32xf32>
    %169 = arith.addf %168, %167 : vector<8x32xf32>
    %170 = arith.divf %168, %169 : vector<8x32xf32>
    %171 = arith.mulf %162, %144 : vector<8x32xf32>
    %172 = arith.mulf %156, %164 : vector<8x32xf32>
    %173 = arith.addf %171, %172 : vector<8x32xf32>
    %174 = math.tanh %173 : vector<8x32xf32>
    %175 = arith.mulf %170, %174 : vector<8x32xf32>
    %c40_43 = arith.constant 40 : index
    %c0_44 = arith.constant 0 : index
    %176 = vector.load %arg9[%c40_43, %c0_44] : memref<64x32xf32, #tpu.memory_space<vmem>>, vector<8x32xf32>
    tpu.vector_store %arg9[%c40_43, %c0_44], %175 {strides = array<i32>} : memref<64x32xf32, #tpu.memory_space<vmem>>, vector<8x32xf32>,
    %c48 = arith.constant 48 : index
    %c0_45 = arith.constant 0 : index
    %177 = vector.load %arg1[%c48, %c0_45] : memref<64x128xf32, #tpu.memory_space<vmem>>, vector<8x128xf32>
    %cst_46 = arith.constant dense<0.000000e+00> : vector<8x128xf32>
    %178 = tpu.matmul %175, %0, %cst_46 {dimension_numbers = #tpu.dot_dimension_numbers<[1], [0], [0], [1], [0, 0, 1, 1], [], []>} : vector<8x32xf32>, vector<32x128xf32>, vector<8x128xf32> -> vector<8x128xf32>
    %179 = arith.addf %177, %178 : vector<8x128xf32>
    %180 = vector.extract_strided_slice %179 {offsets = [0, 0], sizes = [8, 32], strides = [1, 1]} : vector<8x128xf32> to vector<8x32xf32>
    %181 = arith.negf %180 : vector<8x32xf32>
    %182 = math.exp %181 : vector<8x32xf32>
    %cst_47 = arith.constant 1.000000e+00 : f32
    %183 = vector.broadcast %cst_47 : f32 to vector<8x32xf32>
    %184 = arith.addf %183, %182 : vector<8x32xf32>
    %185 = arith.divf %183, %184 : vector<8x32xf32>
    %186 = vector.extract_strided_slice %179 {offsets = [0, 32], sizes = [8, 32], strides = [1, 1]} : vector<8x128xf32> to vector<8x32xf32>
    %187 = arith.negf %186 : vector<8x32xf32>
    %188 = math.exp %187 : vector<8x32xf32>
    %cst_48 = arith.constant 1.000000e+00 : f32
    %189 = vector.broadcast %cst_48 : f32 to vector<8x32xf32>
    %190 = arith.addf %189, %188 : vector<8x32xf32>
    %191 = arith.divf %189, %190 : vector<8x32xf32>
    %192 = vector.extract_strided_slice %179 {offsets = [0, 64], sizes = [8, 32], strides = [1, 1]} : vector<8x128xf32> to vector<8x32xf32>
    %193 = math.tanh %192 : vector<8x32xf32>
    %194 = vector.extract_strided_slice %179 {offsets = [0, 96], sizes = [8, 32], strides = [1, 1]} : vector<8x128xf32> to vector<8x32xf32>
    %195 = arith.negf %194 : vector<8x32xf32>
    %196 = math.exp %195 : vector<8x32xf32>
    %cst_49 = arith.constant 1.000000e+00 : f32
    %197 = vector.broadcast %cst_49 : f32 to vector<8x32xf32>
    %198 = arith.addf %197, %196 : vector<8x32xf32>
    %199 = arith.divf %197, %198 : vector<8x32xf32>
    %200 = arith.mulf %191, %173 : vector<8x32xf32>
    %201 = arith.mulf %185, %193 : vector<8x32xf32>
    %202 = arith.addf %200, %201 : vector<8x32xf32>
    %203 = math.tanh %202 : vector<8x32xf32>
    %204 = arith.mulf %199, %203 : vector<8x32xf32>
    %c48_50 = arith.constant 48 : index
    %c0_51 = arith.constant 0 : index
    %205 = vector.load %arg9[%c48_50, %c0_51] : memref<64x32xf32, #tpu.memory_space<vmem>>, vector<8x32xf32>
    tpu.vector_store %arg9[%c48_50, %c0_51], %204 {strides = array<i32>} : memref<64x32xf32, #tpu.memory_space<vmem>>, vector<8x32xf32>,
    %c56 = arith.constant 56 : index
    %c0_52 = arith.constant 0 : index
    %206 = vector.load %arg1[%c56, %c0_52] : memref<64x128xf32, #tpu.memory_space<vmem>>, vector<8x128xf32>
    %cst_53 = arith.constant dense<0.000000e+00> : vector<8x128xf32>
    %207 = tpu.matmul %204, %0, %cst_53 {dimension_numbers = #tpu.dot_dimension_numbers<[1], [0], [0], [1], [0, 0, 1, 1], [], []>} : vector<8x32xf32>, vector<32x128xf32>, vector<8x128xf32> -> vector<8x128xf32>
    %208 = arith.addf %206, %207 : vector<8x128xf32>
    %209 = vector.extract_strided_slice %208 {offsets = [0, 0], sizes = [8, 32], strides = [1, 1]} : vector<8x128xf32> to vector<8x32xf32>
    %210 = arith.negf %209 : vector<8x32xf32>
    %211 = math.exp %210 : vector<8x32xf32>
    %cst_54 = arith.constant 1.000000e+00 : f32
    %212 = vector.broadcast %cst_54 : f32 to vector<8x32xf32>
    %213 = arith.addf %212, %211 : vector<8x32xf32>
    %214 = arith.divf %212, %213 : vector<8x32xf32>
    %215 = vector.extract_strided_slice %208 {offsets = [0, 32], sizes = [8, 32], strides = [1, 1]} : vector<8x128xf32> to vector<8x32xf32>
    %216 = arith.negf %215 : vector<8x32xf32>
    %217 = math.exp %216 : vector<8x32xf32>
    %cst_55 = arith.constant 1.000000e+00 : f32
    %218 = vector.broadcast %cst_55 : f32 to vector<8x32xf32>
    %219 = arith.addf %218, %217 : vector<8x32xf32>
    %220 = arith.divf %218, %219 : vector<8x32xf32>
    %221 = vector.extract_strided_slice %208 {offsets = [0, 64], sizes = [8, 32], strides = [1, 1]} : vector<8x128xf32> to vector<8x32xf32>
    %222 = math.tanh %221 : vector<8x32xf32>
    %223 = vector.extract_strided_slice %208 {offsets = [0, 96], sizes = [8, 32], strides = [1, 1]} : vector<8x128xf32> to vector<8x32xf32>
    %224 = arith.negf %223 : vector<8x32xf32>
    %225 = math.exp %224 : vector<8x32xf32>
    %cst_56 = arith.constant 1.000000e+00 : f32
    %226 = vector.broadcast %cst_56 : f32 to vector<8x32xf32>
    %227 = arith.addf %226, %225 : vector<8x32xf32>
    %228 = arith.divf %226, %227 : vector<8x32xf32>
    %229 = arith.mulf %220, %202 : vector<8x32xf32>
    %230 = arith.mulf %214, %222 : vector<8x32xf32>
    %231 = arith.addf %229, %230 : vector<8x32xf32>
    %232 = math.tanh %231 : vector<8x32xf32>
    %233 = arith.mulf %228, %232 : vector<8x32xf32>
    %c56_57 = arith.constant 56 : index
    %c0_58 = arith.constant 0 : index
    %234 = vector.load %arg9[%c56_57, %c0_58] : memref<64x32xf32, #tpu.memory_space<vmem>>, vector<8x32xf32>
    tpu.vector_store %arg9[%c56_57, %c0_58], %233 {strides = array<i32>} : memref<64x32xf32, #tpu.memory_space<vmem>>, vector<8x32xf32>,
    %c0_59 = arith.constant 0 : index
    %c0_60 = arith.constant 0 : index
    %235 = vector.load %arg9[%c0_59, %c0_60] : memref<64x32xf32, #tpu.memory_space<vmem>>, vector<64x32xf32>
    %c0_61 = arith.constant 0 : index
    %c0_62 = arith.constant 0 : index
    %236 = vector.load %arg3[%c0_61, %c0_62] : memref<32x128xf32, #tpu.memory_space<vmem>>, vector<32x128xf32>
    %cst_63 = arith.constant dense<0.000000e+00> : vector<64x128xf32>
    %237 = tpu.matmul %235, %236, %cst_63 {dimension_numbers = #tpu.dot_dimension_numbers<[1], [0], [0], [1], [0, 0, 1, 1], [], []>} : vector<64x32xf32>, vector<32x128xf32>, vector<64x128xf32> -> vector<64x128xf32>
    %c0_64 = arith.constant 0 : index
    %c0_65 = arith.constant 0 : index
    %238 = vector.load %arg5[%c0_64, %c0_65] : memref<1x128xf32, #tpu.memory_space<vmem>>, vector<1x128xf32>
    %239 = vector.broadcast %238 : vector<1x128xf32> to vector<64x128xf32>
    %240 = arith.addf %237, %239 : vector<64x128xf32>
    %c0_66 = arith.constant 0 : index
    %c0_67 = arith.constant 0 : index
    %241 = vector.load %arg10[%c0_66, %c0_67] : memref<64x128xf32, #tpu.memory_space<vmem>>, vector<64x128xf32>
    tpu.vector_store %arg10[%c0_66, %c0_67], %240 {strides = array<i32>} : memref<64x128xf32, #tpu.memory_space<vmem>>, vector<64x128xf32>,
    %c0_68 = arith.constant 0 : index
    %c0_69 = arith.constant 0 : index
    %242 = vector.load %arg4[%c0_68, %c0_69] : memref<32x128xf32, #tpu.memory_space<vmem>>, vector<32x128xf32>
    %cst_70 = arith.constant 0.000000e+00 : f32
    %243 = vector.broadcast %cst_70 : f32 to vector<8x32xf32>
    %cst_71 = arith.constant 0.000000e+00 : f32
    %244 = vector.broadcast %cst_71 : f32 to vector<8x32xf32>
    %c0_72 = arith.constant 0 : index
    %c0_73 = arith.constant 0 : index
    %245 = vector.load %arg10[%c0_72, %c0_73] : memref<64x128xf32, #tpu.memory_space<vmem>>, vector<8x128xf32>
    %cst_74 = arith.constant dense<0.000000e+00> : vector<8x128xf32>
    %246 = tpu.matmul %243, %242, %cst_74 {dimension_numbers = #tpu.dot_dimension_numbers<[1], [0], [0], [1], [0, 0, 1, 1], [], []>} : vector<8x32xf32>, vector<32x128xf32>, vector<8x128xf32> -> vector<8x128xf32>
    %247 = arith.addf %245, %246 : vector<8x128xf32>
    %248 = vector.extract_strided_slice %247 {offsets = [0, 0], sizes = [8, 32], strides = [1, 1]} : vector<8x128xf32> to vector<8x32xf32>
    %249 = arith.negf %248 : vector<8x32xf32>
    %250 = math.exp %249 : vector<8x32xf32>
    %cst_75 = arith.constant 1.000000e+00 : f32
    %251 = vector.broadcast %cst_75 : f32 to vector<8x32xf32>
    %252 = arith.addf %251, %250 : vector<8x32xf32>
    %253 = arith.divf %251, %252 : vector<8x32xf32>
    %254 = vector.extract_strided_slice %247 {offsets = [0, 32], sizes = [8, 32], strides = [1, 1]} : vector<8x128xf32> to vector<8x32xf32>
    %255 = arith.negf %254 : vector<8x32xf32>
    %256 = math.exp %255 : vector<8x32xf32>
    %cst_76 = arith.constant 1.000000e+00 : f32
    %257 = vector.broadcast %cst_76 : f32 to vector<8x32xf32>
    %258 = arith.addf %257, %256 : vector<8x32xf32>
    %259 = arith.divf %257, %258 : vector<8x32xf32>
    %260 = vector.extract_strided_slice %247 {offsets = [0, 64], sizes = [8, 32], strides = [1, 1]} : vector<8x128xf32> to vector<8x32xf32>
    %261 = math.tanh %260 : vector<8x32xf32>
    %262 = vector.extract_strided_slice %247 {offsets = [0, 96], sizes = [8, 32], strides = [1, 1]} : vector<8x128xf32> to vector<8x32xf32>
    %263 = arith.negf %262 : vector<8x32xf32>
    %264 = math.exp %263 : vector<8x32xf32>
    %cst_77 = arith.constant 1.000000e+00 : f32
    %265 = vector.broadcast %cst_77 : f32 to vector<8x32xf32>
    %266 = arith.addf %265, %264 : vector<8x32xf32>
    %267 = arith.divf %265, %266 : vector<8x32xf32>
    %268 = arith.mulf %259, %244 : vector<8x32xf32>
    %269 = arith.mulf %253, %261 : vector<8x32xf32>
    %270 = arith.addf %268, %269 : vector<8x32xf32>
    %271 = math.tanh %270 : vector<8x32xf32>
    %272 = arith.mulf %267, %271 : vector<8x32xf32>
    %c8_78 = arith.constant 8 : index
    %c0_79 = arith.constant 0 : index
    %273 = vector.load %arg10[%c8_78, %c0_79] : memref<64x128xf32, #tpu.memory_space<vmem>>, vector<8x128xf32>
    %cst_80 = arith.constant dense<0.000000e+00> : vector<8x128xf32>
    %274 = tpu.matmul %272, %242, %cst_80 {dimension_numbers = #tpu.dot_dimension_numbers<[1], [0], [0], [1], [0, 0, 1, 1], [], []>} : vector<8x32xf32>, vector<32x128xf32>, vector<8x128xf32> -> vector<8x128xf32>
    %275 = arith.addf %273, %274 : vector<8x128xf32>
    %276 = vector.extract_strided_slice %275 {offsets = [0, 0], sizes = [8, 32], strides = [1, 1]} : vector<8x128xf32> to vector<8x32xf32>
    %277 = arith.negf %276 : vector<8x32xf32>
    %278 = math.exp %277 : vector<8x32xf32>
    %cst_81 = arith.constant 1.000000e+00 : f32
    %279 = vector.broadcast %cst_81 : f32 to vector<8x32xf32>
    %280 = arith.addf %279, %278 : vector<8x32xf32>
    %281 = arith.divf %279, %280 : vector<8x32xf32>
    %282 = vector.extract_strided_slice %275 {offsets = [0, 32], sizes = [8, 32], strides = [1, 1]} : vector<8x128xf32> to vector<8x32xf32>
    %283 = arith.negf %282 : vector<8x32xf32>
    %284 = math.exp %283 : vector<8x32xf32>
    %cst_82 = arith.constant 1.000000e+00 : f32
    %285 = vector.broadcast %cst_82 : f32 to vector<8x32xf32>
    %286 = arith.addf %285, %284 : vector<8x32xf32>
    %287 = arith.divf %285, %286 : vector<8x32xf32>
    %288 = vector.extract_strided_slice %275 {offsets = [0, 64], sizes = [8, 32], strides = [1, 1]} : vector<8x128xf32> to vector<8x32xf32>
    %289 = math.tanh %288 : vector<8x32xf32>
    %290 = vector.extract_strided_slice %275 {offsets = [0, 96], sizes = [8, 32], strides = [1, 1]} : vector<8x128xf32> to vector<8x32xf32>
    %291 = arith.negf %290 : vector<8x32xf32>
    %292 = math.exp %291 : vector<8x32xf32>
    %cst_83 = arith.constant 1.000000e+00 : f32
    %293 = vector.broadcast %cst_83 : f32 to vector<8x32xf32>
    %294 = arith.addf %293, %292 : vector<8x32xf32>
    %295 = arith.divf %293, %294 : vector<8x32xf32>
    %296 = arith.mulf %287, %270 : vector<8x32xf32>
    %297 = arith.mulf %281, %289 : vector<8x32xf32>
    %298 = arith.addf %296, %297 : vector<8x32xf32>
    %299 = math.tanh %298 : vector<8x32xf32>
    %300 = arith.mulf %295, %299 : vector<8x32xf32>
    %c16_84 = arith.constant 16 : index
    %c0_85 = arith.constant 0 : index
    %301 = vector.load %arg10[%c16_84, %c0_85] : memref<64x128xf32, #tpu.memory_space<vmem>>, vector<8x128xf32>
    %cst_86 = arith.constant dense<0.000000e+00> : vector<8x128xf32>
    %302 = tpu.matmul %300, %242, %cst_86 {dimension_numbers = #tpu.dot_dimension_numbers<[1], [0], [0], [1], [0, 0, 1, 1], [], []>} : vector<8x32xf32>, vector<32x128xf32>, vector<8x128xf32> -> vector<8x128xf32>
    %303 = arith.addf %301, %302 : vector<8x128xf32>
    %304 = vector.extract_strided_slice %303 {offsets = [0, 0], sizes = [8, 32], strides = [1, 1]} : vector<8x128xf32> to vector<8x32xf32>
    %305 = arith.negf %304 : vector<8x32xf32>
    %306 = math.exp %305 : vector<8x32xf32>
    %cst_87 = arith.constant 1.000000e+00 : f32
    %307 = vector.broadcast %cst_87 : f32 to vector<8x32xf32>
    %308 = arith.addf %307, %306 : vector<8x32xf32>
    %309 = arith.divf %307, %308 : vector<8x32xf32>
    %310 = vector.extract_strided_slice %303 {offsets = [0, 32], sizes = [8, 32], strides = [1, 1]} : vector<8x128xf32> to vector<8x32xf32>
    %311 = arith.negf %310 : vector<8x32xf32>
    %312 = math.exp %311 : vector<8x32xf32>
    %cst_88 = arith.constant 1.000000e+00 : f32
    %313 = vector.broadcast %cst_88 : f32 to vector<8x32xf32>
    %314 = arith.addf %313, %312 : vector<8x32xf32>
    %315 = arith.divf %313, %314 : vector<8x32xf32>
    %316 = vector.extract_strided_slice %303 {offsets = [0, 64], sizes = [8, 32], strides = [1, 1]} : vector<8x128xf32> to vector<8x32xf32>
    %317 = math.tanh %316 : vector<8x32xf32>
    %318 = vector.extract_strided_slice %303 {offsets = [0, 96], sizes = [8, 32], strides = [1, 1]} : vector<8x128xf32> to vector<8x32xf32>
    %319 = arith.negf %318 : vector<8x32xf32>
    %320 = math.exp %319 : vector<8x32xf32>
    %cst_89 = arith.constant 1.000000e+00 : f32
    %321 = vector.broadcast %cst_89 : f32 to vector<8x32xf32>
    %322 = arith.addf %321, %320 : vector<8x32xf32>
    %323 = arith.divf %321, %322 : vector<8x32xf32>
    %324 = arith.mulf %315, %298 : vector<8x32xf32>
    %325 = arith.mulf %309, %317 : vector<8x32xf32>
    %326 = arith.addf %324, %325 : vector<8x32xf32>
    %327 = math.tanh %326 : vector<8x32xf32>
    %328 = arith.mulf %323, %327 : vector<8x32xf32>
    %c24_90 = arith.constant 24 : index
    %c0_91 = arith.constant 0 : index
    %329 = vector.load %arg10[%c24_90, %c0_91] : memref<64x128xf32, #tpu.memory_space<vmem>>, vector<8x128xf32>
    %cst_92 = arith.constant dense<0.000000e+00> : vector<8x128xf32>
    %330 = tpu.matmul %328, %242, %cst_92 {dimension_numbers = #tpu.dot_dimension_numbers<[1], [0], [0], [1], [0, 0, 1, 1], [], []>} : vector<8x32xf32>, vector<32x128xf32>, vector<8x128xf32> -> vector<8x128xf32>
    %331 = arith.addf %329, %330 : vector<8x128xf32>
    %332 = vector.extract_strided_slice %331 {offsets = [0, 0], sizes = [8, 32], strides = [1, 1]} : vector<8x128xf32> to vector<8x32xf32>
    %333 = arith.negf %332 : vector<8x32xf32>
    %334 = math.exp %333 : vector<8x32xf32>
    %cst_93 = arith.constant 1.000000e+00 : f32
    %335 = vector.broadcast %cst_93 : f32 to vector<8x32xf32>
    %336 = arith.addf %335, %334 : vector<8x32xf32>
    %337 = arith.divf %335, %336 : vector<8x32xf32>
    %338 = vector.extract_strided_slice %331 {offsets = [0, 32], sizes = [8, 32], strides = [1, 1]} : vector<8x128xf32> to vector<8x32xf32>
    %339 = arith.negf %338 : vector<8x32xf32>
    %340 = math.exp %339 : vector<8x32xf32>
    %cst_94 = arith.constant 1.000000e+00 : f32
    %341 = vector.broadcast %cst_94 : f32 to vector<8x32xf32>
    %342 = arith.addf %341, %340 : vector<8x32xf32>
    %343 = arith.divf %341, %342 : vector<8x32xf32>
    %344 = vector.extract_strided_slice %331 {offsets = [0, 64], sizes = [8, 32], strides = [1, 1]} : vector<8x128xf32> to vector<8x32xf32>
    %345 = math.tanh %344 : vector<8x32xf32>
    %346 = vector.extract_strided_slice %331 {offsets = [0, 96], sizes = [8, 32], strides = [1, 1]} : vector<8x128xf32> to vector<8x32xf32>
    %347 = arith.negf %346 : vector<8x32xf32>
    %348 = math.exp %347 : vector<8x32xf32>
    %cst_95 = arith.constant 1.000000e+00 : f32
    %349 = vector.broadcast %cst_95 : f32 to vector<8x32xf32>
    %350 = arith.addf %349, %348 : vector<8x32xf32>
    %351 = arith.divf %349, %350 : vector<8x32xf32>
    %352 = arith.mulf %343, %326 : vector<8x32xf32>
    %353 = arith.mulf %337, %345 : vector<8x32xf32>
    %354 = arith.addf %352, %353 : vector<8x32xf32>
    %355 = math.tanh %354 : vector<8x32xf32>
    %356 = arith.mulf %351, %355 : vector<8x32xf32>
    %c32_96 = arith.constant 32 : index
    %c0_97 = arith.constant 0 : index
    %357 = vector.load %arg10[%c32_96, %c0_97] : memref<64x128xf32, #tpu.memory_space<vmem>>, vector<8x128xf32>
    %cst_98 = arith.constant dense<0.000000e+00> : vector<8x128xf32>
    %358 = tpu.matmul %356, %242, %cst_98 {dimension_numbers = #tpu.dot_dimension_numbers<[1], [0], [0], [1], [0, 0, 1, 1], [], []>} : vector<8x32xf32>, vector<32x128xf32>, vector<8x128xf32> -> vector<8x128xf32>
    %359 = arith.addf %357, %358 : vector<8x128xf32>
    %360 = vector.extract_strided_slice %359 {offsets = [0, 0], sizes = [8, 32], strides = [1, 1]} : vector<8x128xf32> to vector<8x32xf32>
    %361 = arith.negf %360 : vector<8x32xf32>
    %362 = math.exp %361 : vector<8x32xf32>
    %cst_99 = arith.constant 1.000000e+00 : f32
    %363 = vector.broadcast %cst_99 : f32 to vector<8x32xf32>
    %364 = arith.addf %363, %362 : vector<8x32xf32>
    %365 = arith.divf %363, %364 : vector<8x32xf32>
    %366 = vector.extract_strided_slice %359 {offsets = [0, 32], sizes = [8, 32], strides = [1, 1]} : vector<8x128xf32> to vector<8x32xf32>
    %367 = arith.negf %366 : vector<8x32xf32>
    %368 = math.exp %367 : vector<8x32xf32>
    %cst_100 = arith.constant 1.000000e+00 : f32
    %369 = vector.broadcast %cst_100 : f32 to vector<8x32xf32>
    %370 = arith.addf %369, %368 : vector<8x32xf32>
    %371 = arith.divf %369, %370 : vector<8x32xf32>
    %372 = vector.extract_strided_slice %359 {offsets = [0, 64], sizes = [8, 32], strides = [1, 1]} : vector<8x128xf32> to vector<8x32xf32>
    %373 = math.tanh %372 : vector<8x32xf32>
    %374 = vector.extract_strided_slice %359 {offsets = [0, 96], sizes = [8, 32], strides = [1, 1]} : vector<8x128xf32> to vector<8x32xf32>
    %375 = arith.negf %374 : vector<8x32xf32>
    %376 = math.exp %375 : vector<8x32xf32>
    %cst_101 = arith.constant 1.000000e+00 : f32
    %377 = vector.broadcast %cst_101 : f32 to vector<8x32xf32>
    %378 = arith.addf %377, %376 : vector<8x32xf32>
    %379 = arith.divf %377, %378 : vector<8x32xf32>
    %380 = arith.mulf %371, %354 : vector<8x32xf32>
    %381 = arith.mulf %365, %373 : vector<8x32xf32>
    %382 = arith.addf %380, %381 : vector<8x32xf32>
    %383 = math.tanh %382 : vector<8x32xf32>
    %384 = arith.mulf %379, %383 : vector<8x32xf32>
    %c40_102 = arith.constant 40 : index
    %c0_103 = arith.constant 0 : index
    %385 = vector.load %arg10[%c40_102, %c0_103] : memref<64x128xf32, #tpu.memory_space<vmem>>, vector<8x128xf32>
    %cst_104 = arith.constant dense<0.000000e+00> : vector<8x128xf32>
    %386 = tpu.matmul %384, %242, %cst_104 {dimension_numbers = #tpu.dot_dimension_numbers<[1], [0], [0], [1], [0, 0, 1, 1], [], []>} : vector<8x32xf32>, vector<32x128xf32>, vector<8x128xf32> -> vector<8x128xf32>
    %387 = arith.addf %385, %386 : vector<8x128xf32>
    %388 = vector.extract_strided_slice %387 {offsets = [0, 0], sizes = [8, 32], strides = [1, 1]} : vector<8x128xf32> to vector<8x32xf32>
    %389 = arith.negf %388 : vector<8x32xf32>
    %390 = math.exp %389 : vector<8x32xf32>
    %cst_105 = arith.constant 1.000000e+00 : f32
    %391 = vector.broadcast %cst_105 : f32 to vector<8x32xf32>
    %392 = arith.addf %391, %390 : vector<8x32xf32>
    %393 = arith.divf %391, %392 : vector<8x32xf32>
    %394 = vector.extract_strided_slice %387 {offsets = [0, 32], sizes = [8, 32], strides = [1, 1]} : vector<8x128xf32> to vector<8x32xf32>
    %395 = arith.negf %394 : vector<8x32xf32>
    %396 = math.exp %395 : vector<8x32xf32>
    %cst_106 = arith.constant 1.000000e+00 : f32
    %397 = vector.broadcast %cst_106 : f32 to vector<8x32xf32>
    %398 = arith.addf %397, %396 : vector<8x32xf32>
    %399 = arith.divf %397, %398 : vector<8x32xf32>
    %400 = vector.extract_strided_slice %387 {offsets = [0, 64], sizes = [8, 32], strides = [1, 1]} : vector<8x128xf32> to vector<8x32xf32>
    %401 = math.tanh %400 : vector<8x32xf32>
    %402 = vector.extract_strided_slice %387 {offsets = [0, 96], sizes = [8, 32], strides = [1, 1]} : vector<8x128xf32> to vector<8x32xf32>
    %403 = arith.negf %402 : vector<8x32xf32>
    %404 = math.exp %403 : vector<8x32xf32>
    %cst_107 = arith.constant 1.000000e+00 : f32
    %405 = vector.broadcast %cst_107 : f32 to vector<8x32xf32>
    %406 = arith.addf %405, %404 : vector<8x32xf32>
    %407 = arith.divf %405, %406 : vector<8x32xf32>
    %408 = arith.mulf %399, %382 : vector<8x32xf32>
    %409 = arith.mulf %393, %401 : vector<8x32xf32>
    %410 = arith.addf %408, %409 : vector<8x32xf32>
    %411 = math.tanh %410 : vector<8x32xf32>
    %412 = arith.mulf %407, %411 : vector<8x32xf32>
    %c48_108 = arith.constant 48 : index
    %c0_109 = arith.constant 0 : index
    %413 = vector.load %arg10[%c48_108, %c0_109] : memref<64x128xf32, #tpu.memory_space<vmem>>, vector<8x128xf32>
    %cst_110 = arith.constant dense<0.000000e+00> : vector<8x128xf32>
    %414 = tpu.matmul %412, %242, %cst_110 {dimension_numbers = #tpu.dot_dimension_numbers<[1], [0], [0], [1], [0, 0, 1, 1], [], []>} : vector<8x32xf32>, vector<32x128xf32>, vector<8x128xf32> -> vector<8x128xf32>
    %415 = arith.addf %413, %414 : vector<8x128xf32>
    %416 = vector.extract_strided_slice %415 {offsets = [0, 0], sizes = [8, 32], strides = [1, 1]} : vector<8x128xf32> to vector<8x32xf32>
    %417 = arith.negf %416 : vector<8x32xf32>
    %418 = math.exp %417 : vector<8x32xf32>
    %cst_111 = arith.constant 1.000000e+00 : f32
    %419 = vector.broadcast %cst_111 : f32 to vector<8x32xf32>
    %420 = arith.addf %419, %418 : vector<8x32xf32>
    %421 = arith.divf %419, %420 : vector<8x32xf32>
    %422 = vector.extract_strided_slice %415 {offsets = [0, 32], sizes = [8, 32], strides = [1, 1]} : vector<8x128xf32> to vector<8x32xf32>
    %423 = arith.negf %422 : vector<8x32xf32>
    %424 = math.exp %423 : vector<8x32xf32>
    %cst_112 = arith.constant 1.000000e+00 : f32
    %425 = vector.broadcast %cst_112 : f32 to vector<8x32xf32>
    %426 = arith.addf %425, %424 : vector<8x32xf32>
    %427 = arith.divf %425, %426 : vector<8x32xf32>
    %428 = vector.extract_strided_slice %415 {offsets = [0, 64], sizes = [8, 32], strides = [1, 1]} : vector<8x128xf32> to vector<8x32xf32>
    %429 = math.tanh %428 : vector<8x32xf32>
    %430 = vector.extract_strided_slice %415 {offsets = [0, 96], sizes = [8, 32], strides = [1, 1]} : vector<8x128xf32> to vector<8x32xf32>
    %431 = arith.negf %430 : vector<8x32xf32>
    %432 = math.exp %431 : vector<8x32xf32>
    %cst_113 = arith.constant 1.000000e+00 : f32
    %433 = vector.broadcast %cst_113 : f32 to vector<8x32xf32>
    %434 = arith.addf %433, %432 : vector<8x32xf32>
    %435 = arith.divf %433, %434 : vector<8x32xf32>
    %436 = arith.mulf %427, %410 : vector<8x32xf32>
    %437 = arith.mulf %421, %429 : vector<8x32xf32>
    %438 = arith.addf %436, %437 : vector<8x32xf32>
    %439 = math.tanh %438 : vector<8x32xf32>
    %440 = arith.mulf %435, %439 : vector<8x32xf32>
    %c56_114 = arith.constant 56 : index
    %c0_115 = arith.constant 0 : index
    %441 = vector.load %arg10[%c56_114, %c0_115] : memref<64x128xf32, #tpu.memory_space<vmem>>, vector<8x128xf32>
    %cst_116 = arith.constant dense<0.000000e+00> : vector<8x128xf32>
    %442 = tpu.matmul %440, %242, %cst_116 {dimension_numbers = #tpu.dot_dimension_numbers<[1], [0], [0], [1], [0, 0, 1, 1], [], []>} : vector<8x32xf32>, vector<32x128xf32>, vector<8x128xf32> -> vector<8x128xf32>
    %443 = arith.addf %441, %442 : vector<8x128xf32>
    %444 = vector.extract_strided_slice %443 {offsets = [0, 0], sizes = [8, 32], strides = [1, 1]} : vector<8x128xf32> to vector<8x32xf32>
    %445 = arith.negf %444 : vector<8x32xf32>
    %446 = math.exp %445 : vector<8x32xf32>
    %cst_117 = arith.constant 1.000000e+00 : f32
    %447 = vector.broadcast %cst_117 : f32 to vector<8x32xf32>
    %448 = arith.addf %447, %446 : vector<8x32xf32>
    %449 = arith.divf %447, %448 : vector<8x32xf32>
    %450 = vector.extract_strided_slice %443 {offsets = [0, 32], sizes = [8, 32], strides = [1, 1]} : vector<8x128xf32> to vector<8x32xf32>
    %451 = arith.negf %450 : vector<8x32xf32>
    %452 = math.exp %451 : vector<8x32xf32>
    %cst_118 = arith.constant 1.000000e+00 : f32
    %453 = vector.broadcast %cst_118 : f32 to vector<8x32xf32>
    %454 = arith.addf %453, %452 : vector<8x32xf32>
    %455 = arith.divf %453, %454 : vector<8x32xf32>
    %456 = vector.extract_strided_slice %443 {offsets = [0, 64], sizes = [8, 32], strides = [1, 1]} : vector<8x128xf32> to vector<8x32xf32>
    %457 = math.tanh %456 : vector<8x32xf32>
    %458 = vector.extract_strided_slice %443 {offsets = [0, 96], sizes = [8, 32], strides = [1, 1]} : vector<8x128xf32> to vector<8x32xf32>
    %459 = arith.negf %458 : vector<8x32xf32>
    %460 = math.exp %459 : vector<8x32xf32>
    %cst_119 = arith.constant 1.000000e+00 : f32
    %461 = vector.broadcast %cst_119 : f32 to vector<8x32xf32>
    %462 = arith.addf %461, %460 : vector<8x32xf32>
    %463 = arith.divf %461, %462 : vector<8x32xf32>
    %464 = arith.mulf %455, %438 : vector<8x32xf32>
    %465 = arith.mulf %449, %457 : vector<8x32xf32>
    %466 = arith.addf %464, %465 : vector<8x32xf32>
    %467 = math.tanh %466 : vector<8x32xf32>
    %468 = arith.mulf %463, %467 : vector<8x32xf32>
    %c0_120 = arith.constant 0 : index
    %c0_121 = arith.constant 0 : index
    %469 = vector.load %arg6[%c0_120, %c0_121] : memref<1x32xf32, #tpu.memory_space<vmem>>, vector<1x32xf32>
    %470 = vector.broadcast %469 : vector<1x32xf32> to vector<8x32xf32>
    %471 = arith.mulf %468, %470 : vector<8x32xf32>
    %cst_122 = arith.constant dense<0.000000e+00> : vector<8xf32>
    %472 = vector.multi_reduction <add>, %471, %cst_122 [1] : vector<8x32xf32> to vector<8xf32>
    %473 = vector.shape_cast %472 : vector<8xf32> to vector<8x1xf32>
    %c0_123 = arith.constant 0 : index
    %c0_124 = arith.constant 0 : index
    %474 = vector.load %arg7[%c0_123, %c0_124] : memref<1x1xf32, #tpu.memory_space<vmem>>, vector<1x1xf32>
    %475 = vector.broadcast %474 : vector<1x1xf32> to vector<8x1xf32>
    %476 = arith.addf %473, %475 : vector<8x1xf32>
    %477 = arith.negf %476 : vector<8x1xf32>
    %478 = math.exp %477 : vector<8x1xf32>
    %cst_125 = arith.constant 1.000000e+00 : f32
    %479 = vector.broadcast %cst_125 : f32 to vector<8x1xf32>
    %480 = arith.addf %479, %478 : vector<8x1xf32>
    %481 = arith.divf %479, %480 : vector<8x1xf32>
    %c0_126 = arith.constant 0 : index
    %c0_127 = arith.constant 0 : index
    %482 = vector.load %arg8[%c0_126, %c0_127] : memref<8x1xf32, #tpu.memory_space<vmem>>, vector<8x1xf32>
    tpu.vector_store %arg8[%c0_126, %c0_127], %481 {strides = array<i32>} : memref<8x1xf32, #tpu.memory_space<vmem>>, vector<8x1xf32>,
    return
  }
  func.func @transform_0(%arg0: i32) -> (i32, i32) {
    %c0_i32 = arith.constant 0 : i32
    %c0_i32_0 = arith.constant 0 : i32
    %c0_i32_1 = arith.constant 0 : i32
    return %c0_i32, %c0_i32_0 : i32, i32
  }
  func.func @transform_1(%arg0: i32) -> (i32, i32) {
    %c0_i32 = arith.constant 0 : i32
    %c0_i32_0 = arith.constant 0 : i32
    %c0_i32_1 = arith.constant 0 : i32
    return %c0_i32, %c0_i32_0 : i32, i32
  }
  func.func @transform_2(%arg0: i32) -> (i32, i32) {
    %c0_i32 = arith.constant 0 : i32
    %c0_i32_0 = arith.constant 0 : i32
    %c0_i32_1 = arith.constant 0 : i32
    return %c0_i32, %c0_i32_0 : i32, i32
  }
  func.func @transform_3(%arg0: i32) -> (i32, i32) {
    %c0_i32 = arith.constant 0 : i32
    %c0_i32_0 = arith.constant 0 : i32
    %c0_i32_1 = arith.constant 0 : i32
    return %c0_i32, %c0_i32_0 : i32, i32
  }
  func.func @transform_4(%arg0: i32) -> (i32, i32) {
    %c0_i32 = arith.constant 0 : i32
    %c0_i32_0 = arith.constant 0 : i32
    %c0_i32_1 = arith.constant 0 : i32
    return %c0_i32, %c0_i32_0 : i32, i32
  }
  func.func @transform_5(%arg0: i32) -> (i32, i32) {
    %c0_i32 = arith.constant 0 : i32
    %c0_i32_0 = arith.constant 0 : i32
    %c0_i32_1 = arith.constant 0 : i32
    return %c0_i32, %c0_i32_0 : i32, i32
  }
  func.func @transform_6(%arg0: i32) -> (i32, i32) {
    %c0_i32 = arith.constant 0 : i32
    %c0_i32_0 = arith.constant 0 : i32
    %c0_i32_1 = arith.constant 0 : i32
    return %c0_i32, %c0_i32_0 : i32, i32
  }
  func.func @transform_7(%arg0: i32) -> (i32, i32) {
    %c0_i32 = arith.constant 0 : i32
    %c0_i32_0 = arith.constant 0 : i32
    %c0_i32_1 = arith.constant 0 : i32
    return %c0_i32, %c0_i32_0 : i32, i32
  }
}

</mosaic_0001>

<bundles_post_ra>
// kernel: lstm_net_forward.1
= control target key start
LH: loop header
LB: loop body
LE: loop exit
PB: predicated region body
PF: predicated region fallthrough
CT: control target
= control target key end

     0   :  { %v1388_v4 = vmov 0.0   ;;  %s1389_s10 = smov 64   ;;  %s1390_s11 = smov 32   ;;  %vm33_vm4 = vcmask 261120   ;;  %s1719_s1 = inlined_call_operand.vmem [shape: f32[32,128], index: 1, kind: input, shape index: {}]   ;;  %s1720_s0 = inlined_call_operand.vmem [shape: f32[64,128], index: 0, kind: input, shape index: {}]   ;;  %s1721_s2 = inlined_call_operand.vmem [shape: f32[32,128], index: 2, kind: input, shape index: {}]   ;;  %s1722_s4 = inlined_call_operand.vmem [shape: f32[1,128], index: 4, kind: input, shape index: {}]   ;;  %s1723_s3 = inlined_call_operand.vmem [shape: f32[32,128], index: 3, kind: input, shape index: {}]   ;;  %s1724_s5 = inlined_call_operand.vmem [shape: f32[1,32], index: 5, kind: input, shape index: {}]   ;;  %s1725_s6 = inlined_call_operand.<no memory space> [shape: f32[1,1], index: 6, kind: input, shape index: {}]   ;;  %s1726_s7 = inlined_call_operand.vmem [shape: f32[8,1], index: 7, kind: output, shape index: {}]  }
   0x1   :  { %v1435_v0 = vld [vmem:[%s1719_s1 + $0x18] sm:$0xff]  ;;  %v1440_v1 = vld [vmem:[%s1719_s1 + $0x10] sm:$0xff]  ;;  %v1447_v2 = vld [vmem:[%s1719_s1 + $0x8] sm:$0xff]  ;;  %s1391_s20 = smov 96  }
   0x2   :  { %49 = vmatpush.msra.mxu0 %v1435_v0  ;;  %115 = vmatpush.msra.mxu1 %v1435_v0  ;;  %v1455_v3 = vld [vmem:[%s1719_s1] sm:$0xff]  ;;  %v100_v31 = vld [vmem:[%s1720_s0 + $0x8] sm:$0xff]  ;;  %v166_v57 = vld [vmem:[%s1720_s0 + $0x10] sm:$0xff] }
   0x3   :  { %181 = vmatpush.msra.mxu2 %v1435_v0  ;;  %v32_v5 = vld [vmem:[%s1720_s0] sm:$0xff] }
   0x4   :  { %50 = vmatpush.msra.mxu0 %v1440_v1  ;;  %116 = vmatpush.msra.mxu1 %v1440_v1 }
   0x5   :  { %182 = vmatpush.msra.mxu2 %v1440_v1 }
   0x6   :  { %51 = vmatpush.msra.mxu0 %v1447_v2  ;;  %117 = vmatpush.msra.mxu1 %v1447_v2 }
   0x7   :  { %183 = vmatpush.msra.mxu2 %v1447_v2 }
   0x8   :  { %52 = vmatpush.msra.mxu0 %v1455_v3  ;;  %118 = vmatpush.msra.mxu1 %v1455_v3 }
   0x9   :  { %53 = vmatmul.f32.vlgmr.msra.gmra.mxu0 %v1388_v4  ;;  %184 = vmatpush.msra.mxu2 %v1455_v3 }
   0xa   :  { %247 = vmatpush.msrb.mxu1 %v1435_v0  ;;  %313 = vmatpush.msrb.mxu0 %v1435_v0 }
   0xb   :  { %445 = vmatpush.msrb.mxu2 %v1435_v0 }
   0xc   :  { %248 = vmatpush.msrb.mxu1 %v1440_v1  ;;  %314 = vmatpush.msrb.mxu0 %v1440_v1 }
   0xd   :  { %446 = vmatpush.msrb.mxu2 %v1440_v1 }
   0xe   :  { %249 = vmatpush.msrb.mxu1 %v1447_v2  ;;  %315 = vmatpush.msrb.mxu0 %v1447_v2 }
   0xf   :  { %447 = vmatpush.msrb.mxu2 %v1447_v2 }
  0x10   :  { %250 = vmatpush.msrb.mxu1 %v1455_v3  ;;  %316 = vmatpush.msrb.mxu0 %v1455_v3 }
  0x11   :  { %448 = vmatpush.msrb.mxu2 %v1455_v3 }
  0x86   :  { %v54_v6 = vpop.f32.mrf.mxu0 }
  0x87   :  { %v57_v7 = vadd.f32 %v54_v6, %v32_v5 }
  0x89   :  { %1256 = vtanh.f32 %v57_v7  ;;  %v1206_v9 = vmul.f32 -1.442695, %v57_v7 }
  0x8b   :  { %1258 = vpow2.f32 %v1206_v9 }
  0x8f   :  { %v1257_v8 = vpop.eup %1256 }
  0x90   :  { %80 = vrot.lane.b32.xlu0 %v1257_v8, %s1389_s10 }
  0x91   :  { %v1259_v10 = vpop.eup %1258 }
  0x92   :  { %v61_v11 = vadd.f32 1.0, %v1259_v10 }
  0x94   :  { %1260 = vrcp.f32 %v61_v11  ;;  %v73_v17 = vand.u32 2147483648, %v61_v11  ;;  %vm67_vm1 = vweird.f32 %v61_v11  ;;  %v71_v18 = vand.u32 2147483647, %v61_v11 }
  0x96   :  { %v74_v20 = vor.u32 1.1754944e-38, %v73_v17  ;;  %vm72_vm3 = vcmp.eq.f32.partialorder %v71_v18, 8.507059e+37 }
  0x9a   :  { %v1261_v12 = vpop.eup %1260 }
  0x9b   :  { %v63_v13 = vmul.f32 %v1261_v12, %v61_v11  ;;  %vm68_vm0 = vweird.f32 %v1261_v12 }
  0x9c   :  { %vm69_vm2 = vmor %vm67_vm1, %vm68_vm0 }
  0x9d   :  { %v64_v14 = vsub.f32 1.0, %v63_v13 }
  0x9f   :  { %v65_v15 = vmul.f32 %v1261_v12, %v64_v14 }
  0xa1   :  { %v66_v16 = vadd.f32 %v1261_v12, %v65_v15 }
  0xa3   :  { %v70_v19 = vsel %vm69_vm2, %v1261_v12, %v66_v16 }
  0xa4   :  { %v75_v22 = vsel %vm72_vm3, %v74_v20, %v70_v19  ;;  %v232_v20 = vld [vmem:[%s1720_s0 + $0x18] sm:$0xff] }
  0xa5   :  { %v78_v24 = vmul.f32 0.0, %v75_v22 }
 0x102   :  { %v81_v21 = vpop.permute.xlu0 %80 }
 0x103   :  { %v83_v23 = vmul.f32 %v81_v21, %v75_v22 }
 0x105   :  { %85 = vrot.lane.b32.xlu0 %v83_v23, %s1390_s11 }
 0x177   :  { %v86_v25 = vpop.permute.xlu0 %85 }
 0x178   :  { %v88_v26 = vadd.f32 %v86_v25, %v78_v24 }
 0x17a   :  { %1262 = vtanh.f32 %v88_v26 }
 0x180   :  { %v1263_v27 = vpop.eup %1262 }
 0x181   :  { %91 = vrot.lane.b32.xlu1 %v1263_v27, %s1389_s10 }
 0x1f3   :  { %v92_v28 = vpop.permute.xlu1 %91 }
 0x1f4   :  { %v94_v29 = vmul.f32 %v92_v28, %v75_v22 }
 0x1f6   :  { %96 = vrot.lane.b32.xlu1 %v94_v29, %s1390_s11 }
 0x268   :  { %v97_v30 = vpop.permute.xlu1 %96 }
 0x269   :  { %99 = vst.msk [vmem:[#allocation2] sm:$0xff] %vm33_vm4, %v97_v30  ;;  %1207 = vmatmul.msk.f32.vlgmr.msra.gmra.mxu1 %vm33_vm4, %v97_v30 }
 0x26a   :  { %379 = vmatpush.msra.mxu1 %v1435_v0 }
 0x26c   :  { %380 = vmatpush.msra.mxu1 %v1440_v1 }
 0x26e   :  { %381 = vmatpush.msra.mxu1 %v1447_v2 }
 0x270   :  { %382 = vmatpush.msra.mxu1 %v1455_v3 }
 0x2e6   :  { %v120_v32 = vpop.f32.mrf.mxu1 }
 0x2e7   :  { %v123_v33 = vadd.f32 %v120_v32, %v100_v31 }
 0x2e9   :  { %1264 = vtanh.f32 %v123_v33  ;;  %v1208_v35 = vmul.f32 -1.442695, %v123_v33 }
 0x2eb   :  { %1266 = vpow2.f32 %v1208_v35 }
 0x2ef   :  { %v1265_v34 = vpop.eup %1264 }
 0x2f0   :  { %146 = vrot.lane.b32.xlu2 %v1265_v34, %s1389_s10 }
 0x2f1   :  { %v1267_v36 = vpop.eup %1266 }
 0x2f2   :  { %v127_v37 = vadd.f32 1.0, %v1267_v36 }
 0x2f4   :  { %1268 = vrcp.f32 %v127_v37  ;;  %v139_v43 = vand.u32 2147483648, %v127_v37  ;;  %vm133_vm6 = vweird.f32 %v127_v37  ;;  %v137_v44 = vand.u32 2147483647, %v127_v37 }
 0x2f6   :  { %v140_v46 = vor.u32 1.1754944e-38, %v139_v43  ;;  %vm138_vm8 = vcmp.eq.f32.partialorder %v137_v44, 8.507059e+37 }
 0x2fa   :  { %v1269_v38 = vpop.eup %1268 }
 0x2fb   :  { %v129_v39 = vmul.f32 %v1269_v38, %v127_v37  ;;  %vm134_vm5 = vweird.f32 %v1269_v38 }
 0x2fc   :  { %vm135_vm7 = vmor %vm133_vm6, %vm134_vm5 }
 0x2fd   :  { %v130_v40 = vsub.f32 1.0, %v129_v39 }
 0x2ff   :  { %v131_v41 = vmul.f32 %v1269_v38, %v130_v40 }
 0x301   :  { %v132_v42 = vadd.f32 %v1269_v38, %v131_v41 }
 0x303   :  { %v136_v45 = vsel %vm135_vm7, %v1269_v38, %v132_v42 }
 0x304   :  { %v141_v48 = vsel %vm138_vm8, %v140_v46, %v136_v45  ;;  %v573_v45 = vld [vmem:[%s1721_s2 + $0x18] sm:$0xff]  ;;  %v572_v46 = vld [vmem:[%s1721_s2 + $0x10] sm:$0xff] }
 0x305   :  { %v144_v50 = vmul.f32 %v141_v48, %v88_v26  ;;  %614 = vmatpush.msra.mxu0 %v573_v45  ;;  %1245 = vmatpush.msra.mxu3 %v573_v45 }
 0x307   :  { %615 = vmatpush.msra.mxu0 %v572_v46  ;;  %1246 = vmatpush.msra.mxu3 %v572_v46 }
 0x34a   :  { %v147_v47 = vpop.permute.xlu2 %146 }
 0x34b   :  { %v149_v49 = vmul.f32 %v147_v47, %v141_v48  ;;  %v571_v47 = vld [vmem:[%s1721_s2 + $0x8] sm:$0xff] }
 0x34c   :  { %616 = vmatpush.msra.mxu0 %v571_v47  ;;  %1247 = vmatpush.msra.mxu3 %v571_v47 }
 0x34d   :  { %151 = vrot.lane.b32.xlu2 %v149_v49, %s1390_s11 }
 0x3a7   :  { %v152_v51 = vpop.permute.xlu2 %151 }
 0x3a8   :  { %v154_v52 = vadd.f32 %v152_v51, %v144_v50  ;;  %v562_v50 = vld [vmem:[#allocation2] sm:$0xff] }
 0x3aa   :  { %1270 = vtanh.f32 %v154_v52 }
 0x3b0   :  { %v1271_v53 = vpop.eup %1270 }
 0x3b1   :  { %157 = vrot.lane.b32.xlu0 %v1271_v53, %s1389_s10 }
 0x423   :  { %v158_v54 = vpop.permute.xlu0 %157 }
 0x424   :  { %v160_v55 = vmul.f32 %v158_v54, %v141_v48  ;;  %v570_v48 = vld [vmem:[%s1721_s2] sm:$0xff] }
 0x425   :  { %617 = vmatpush.msra.mxu0 %v570_v48  ;;  %1248 = vmatpush.msra.mxu3 %v570_v48  ;;  %v298_v54 = vld [vmem:[%s1720_s0 + $0x20] sm:$0xff] }
 0x426   :  { %162 = vrot.lane.b32.xlu1 %v160_v55, %s1390_s11 }
 0x498   :  { %v163_v56 = vpop.permute.xlu1 %162 }
 0x499   :  { %165 = vst.msk [vmem:[#allocation2 + $0x8] sm:$0xff] %vm33_vm4, %v163_v56  ;;  %1209 = vmatmul.msk.f32.vlgmr.msra.gmra.mxu2 %vm33_vm4, %v163_v56 }
 0x49a   :  { %511 = vmatpush.msra.mxu2 %v1435_v0 }
 0x49c   :  { %512 = vmatpush.msra.mxu2 %v1440_v1 }
 0x49e   :  { %513 = vmatpush.msra.mxu2 %v1447_v2 }
 0x4a0   :  { %514 = vmatpush.msra.mxu2 %v1455_v3  ;;  %v563_v51 = vld [vmem:[#allocation2 + $0x8] sm:$0xff] }
 0x51c   :  { %v186_v58 = vpop.f32.mrf.mxu2 }
 0x51d   :  { %v189_v59 = vadd.f32 %v186_v58, %v166_v57 }
 0x51f   :  { %1272 = vtanh.f32 %v189_v59  ;;  %v1210_v61 = vmul.f32 -1.442695, %v189_v59 }
 0x521   :  { %1274 = vpow2.f32 %v1210_v61 }
 0x525   :  { %v1273_v60 = vpop.eup %1272 }
 0x526   :  { %212 = vrot.lane.b32.xlu2 %v1273_v60, %s1389_s10 }
 0x527   :  { %v1275_v62 = vpop.eup %1274 }
 0x528   :  { %v193_v63 = vadd.f32 1.0, %v1275_v62 }
 0x52a   :  { %1276 = vrcp.f32 %v193_v63  ;;  %v205_v6 = vand.u32 2147483648, %v193_v63  ;;  %vm199_vm10 = vweird.f32 %v193_v63  ;;  %v203_v7 = vand.u32 2147483647, %v193_v63 }
 0x52c   :  { %v206_v9 = vor.u32 1.1754944e-38, %v205_v6  ;;  %vm204_vm12 = vcmp.eq.f32.partialorder %v203_v7, 8.507059e+37 }
 0x530   :  { %v1277_v0 = vpop.eup %1276 }
 0x531   :  { %v195_v1 = vmul.f32 %v1277_v0, %v193_v63  ;;  %vm200_vm9 = vweird.f32 %v1277_v0 }
 0x532   :  { %vm201_vm11 = vmor %vm199_vm10, %vm200_vm9 }
 0x533   :  { %v196_v2 = vsub.f32 1.0, %v195_v1 }
 0x535   :  { %v197_v5 = vmul.f32 %v1277_v0, %v196_v2 }
 0x537   :  { %v198_v3 = vadd.f32 %v1277_v0, %v197_v5 }
 0x539   :  { %v202_v8 = vsel %vm201_vm11, %v1277_v0, %v198_v3 }
 0x53a   :  { %v207_v11 = vsel %vm204_vm12, %v206_v9, %v202_v8 }
 0x53b   :  { %v210_v13 = vmul.f32 %v207_v11, %v154_v52 }
 0x580   :  { %v213_v10 = vpop.permute.xlu2 %212 }
 0x581   :  { %v215_v12 = vmul.f32 %v213_v10, %v207_v11 }
 0x583   :  { %217 = vrot.lane.b32.xlu0 %v215_v12, %s1390_s11 }
 0x5f5   :  { %v218_v14 = vpop.permute.xlu0 %217 }
 0x5f6   :  { %v220_v15 = vadd.f32 %v218_v14, %v210_v13 }
 0x5f8   :  { %1278 = vtanh.f32 %v220_v15 }
 0x5fe   :  { %v1279_v16 = vpop.eup %1278 }
 0x5ff   :  { %223 = vrot.lane.b32.xlu1 %v1279_v16, %s1389_s10  ;;  %v1550_v16 = vld [vmem:[%s1723_s3 + $0x18] sm:$0xff] }
 0x600   :  { %796 = vmatpush.msrb.mxu3 %v1550_v16 }
 0x671   :  { %v224_v17 = vpop.permute.xlu1 %223 }
 0x672   :  { %v226_v18 = vmul.f32 %v224_v17, %v207_v11  ;;  %v1555_v17 = vld [vmem:[%s1723_s3 + $0x10] sm:$0xff] }
 0x673   :  { %797 = vmatpush.msrb.mxu3 %v1555_v17 }
 0x674   :  { %228 = vrot.lane.b32.xlu2 %v226_v18, %s1390_s11  ;;  %v1562_v18 = vld [vmem:[%s1723_s3 + $0x8] sm:$0xff] }
 0x675   :  { %798 = vmatpush.msrb.mxu3 %v1562_v18 }
 0x6ce   :  { %v229_v19 = vpop.permute.xlu2 %228 }
 0x6cf   :  { %231 = vst.msk [vmem:[#allocation2 + $0x10] sm:$0xff] %vm33_vm4, %v229_v19  ;;  %1211 = vmatmul.msk.f32.vlgmr.msrb.gmra.mxu1 %vm33_vm4, %v229_v19  ;;  %v1569_v19 = vld [vmem:[%s1723_s3] sm:$0xff] }
 0x6d0   :  { %668 = vmatpush.msrb.mxu1 %v1550_v16  ;;  %799 = vmatpush.msrb.mxu3 %v1569_v19 }
 0x6d2   :  { %669 = vmatpush.msrb.mxu1 %v1555_v17 }
 0x6d4   :  { %670 = vmatpush.msrb.mxu1 %v1562_v18 }
 0x6d6   :  { %v564_v52 = vld [vmem:[#allocation2 + $0x10] sm:$0xff]  ;;  %671 = vmatpush.msrb.mxu1 %v1569_v19 }
 0x74c   :  { %v252_v21 = vpop.f32.mrf.mxu1 }
 0x74d   :  { %v255_v22 = vadd.f32 %v252_v21, %v232_v20 }
 0x74f   :  { %1280 = vtanh.f32 %v255_v22  ;;  %v1212_v24 = vmul.f32 -1.442695, %v255_v22 }
 0x751   :  { %1282 = vpow2.f32 %v1212_v24 }
 0x755   :  { %v1281_v23 = vpop.eup %1280 }
 0x756   :  { %278 = vrot.lane.b32.xlu0 %v1281_v23, %s1389_s10 }
 0x757   :  { %v1283_v25 = vpop.eup %1282 }
 0x758   :  { %v259_v26 = vadd.f32 1.0, %v1283_v25 }
 0x75a   :  { %1284 = vrcp.f32 %v259_v26  ;;  %v271_v32 = vand.u32 2147483648, %v259_v26  ;;  %vm265_vm14 = vweird.f32 %v259_v26  ;;  %v269_v33 = vand.u32 2147483647, %v259_v26 }
 0x75c   :  { %v272_v35 = vor.u32 1.1754944e-38, %v271_v32  ;;  %vm270_vm0 = vcmp.eq.f32.partialorder %v269_v33, 8.507059e+37 }
 0x760   :  { %v1285_v27 = vpop.eup %1284 }
 0x761   :  { %v261_v28 = vmul.f32 %v1285_v27, %v259_v26  ;;  %vm266_vm13 = vweird.f32 %v1285_v27 }
 0x762   :  { %vm267_vm15 = vmor %vm265_vm14, %vm266_vm13 }
 0x763   :  { %v262_v29 = vsub.f32 1.0, %v261_v28 }
 0x765   :  { %v263_v30 = vmul.f32 %v1285_v27, %v262_v29 }
 0x767   :  { %v264_v31 = vadd.f32 %v1285_v27, %v263_v30 }
 0x769   :  { %v268_v34 = vsel %vm267_vm15, %v1285_v27, %v264_v31 }
 0x76a   :  { %v273_v37 = vsel %vm270_vm0, %v272_v35, %v268_v34 }
 0x76b   :  { %v276_v39 = vmul.f32 %v273_v37, %v220_v15 }
 0x7c8   :  { %v279_v36 = vpop.permute.xlu0 %278 }
 0x7c9   :  { %v281_v38 = vmul.f32 %v279_v36, %v273_v37 }
 0x7cb   :  { %283 = vrot.lane.b32.xlu1 %v281_v38, %s1390_s11 }
 0x83d   :  { %v284_v40 = vpop.permute.xlu1 %283 }
 0x83e   :  { %v286_v41 = vadd.f32 %v284_v40, %v276_v39 }
 0x840   :  { %1286 = vtanh.f32 %v286_v41 }
 0x846   :  { %v1287_v42 = vpop.eup %1286 }
 0x847   :  { %289 = vrot.lane.b32.xlu2 %v1287_v42, %s1389_s10  ;;  %v1600_v42 = vld [vmem:[%s1722_s4] ss:$0 sm:$0xff] }
 0x8a1   :  { %v290_v43 = vpop.permute.xlu2 %289 }
 0x8a2   :  { %v292_v44 = vmul.f32 %v290_v43, %v273_v37 }
 0x8a4   :  { %294 = vrot.lane.b32.xlu0 %v292_v44, %s1390_s11 }
 0x916   :  { %v295_v49 = vpop.permute.xlu0 %294 }
 0x917   :  { %297 = vst.msk [vmem:[#allocation2 + $0x18] sm:$0xff] %vm33_vm4, %v295_v49  ;;  %1213 = vmatmul.msk.f32.vlgmr.msrb.gmra.mxu0 %vm33_vm4, %v295_v49 }
 0x91e   :  { %v565_v53 = vld [vmem:[#allocation2 + $0x18] sm:$0xff] }
 0x91f   :  { %1221 = vmatmul.msk.f32.vlgmr.msra.gmra.mxu0 %vm33_vm4, %v562_v50 }
 0x927   :  { %1222 = vmatmul.msk.f32.gmra.mxu0 %vm33_vm4, %v563_v51 }
 0x92f   :  { %1223 = vmatmul.msk.f32.gmra.mxu0 %vm33_vm4, %v564_v52 }
 0x937   :  { %1224 = vmatmul.msk.f32.gmra.mxu0 %vm33_vm4, %v565_v53 }
 0x994   :  { %v318_v55 = vpop.f32.mrf.mxu0 }
 0x995   :  { %v321_v56 = vadd.f32 %v318_v55, %v298_v54 }
 0x997   :  { %1288 = vtanh.f32 %v321_v56  ;;  %v1214_v58 = vmul.f32 -1.442695, %v321_v56 }
 0x999   :  { %1290 = vpow2.f32 %v1214_v58 }
 0x99c   :  { %v619_v44 = vpop.f32.mrf.mxu0 }
 0x99d   :  { %v1289_v57 = vpop.eup %1288  ;;  %v620_v46 = vadd.f32 %v1600_v42, %v619_v44  ;;  %v496_v44 = vld [vmem:[%s1720_s0 + $0x38] sm:$0xff] }
 0x99e   :  { %344 = vrot.lane.b32.xlu1 %v1289_v57, %s1389_s10 }
 0x99f   :  { %v1291_v59 = vpop.eup %1290 }
 0x9a0   :  { %v325_v60 = vadd.f32 1.0, %v1291_v59  ;;  %v430_v59 = vld [vmem:[%s1720_s0 + $0x30] sm:$0xff] }
 0x9a2   :  { %1292 = vrcp.f32 %v325_v60  ;;  %v337_v2 = vand.u32 2147483648, %v325_v60  ;;  %vm331_vm2 = vweird.f32 %v325_v60  ;;  %v335_v5 = vand.u32 2147483647, %v325_v60 }
 0x9a4   :  { %v338_v6 = vor.u32 1.1754944e-38, %v337_v2  ;;  %vm336_vm5 = vcmp.eq.f32.partialorder %v335_v5, 8.507059e+37 }
 0x9a8   :  { %v1293_v61 = vpop.eup %1292 }
 0x9a9   :  { %v327_v62 = vmul.f32 %v1293_v61, %v325_v60  ;;  %vm332_vm1 = vweird.f32 %v1293_v61 }
 0x9aa   :  { %vm333_vm3 = vmor %vm331_vm2, %vm332_vm1 }
 0x9ab   :  { %v328_v63 = vsub.f32 1.0, %v327_v62 }
 0x9ad   :  { %v329_v0 = vmul.f32 %v1293_v61, %v328_v63 }
 0x9af   :  { %v330_v1 = vadd.f32 %v1293_v61, %v329_v0 }
 0x9b1   :  { %v334_v3 = vsel %vm333_vm3, %v1293_v61, %v330_v1 }
 0x9b2   :  { %v339_v8 = vsel %vm336_vm5, %v338_v6, %v334_v3 }
 0x9b3   :  { %v342_v10 = vmul.f32 %v339_v8, %v286_v41 }
 0xa10   :  { %v345_v7 = vpop.permute.xlu1 %344 }
 0xa11   :  { %v347_v9 = vmul.f32 %v345_v7, %v339_v8 }
 0xa13   :  { %349 = vrot.lane.b32.xlu2 %v347_v9, %s1390_s11 }
 0xa6d   :  { %v350_v11 = vpop.permute.xlu2 %349 }
 0xa6e   :  { %v1542_v12 = vadd.f32 %v350_v11, %v342_v10 }
 0xa70   :  { %1294 = vtanh.f32 %v1542_v12 }
 0xa76   :  { %v1295_v13 = vpop.eup %1294 }
 0xa77   :  { %355 = vrot.lane.b32.xlu0 %v1295_v13, %s1389_s10 }
 0xae9   :  { %v356_v14 = vpop.permute.xlu0 %355 }
 0xaea   :  { %v358_v15 = vmul.f32 %v356_v14, %v339_v8 }
 0xaec   :  { %360 = vrot.lane.b32.xlu1 %v358_v15, %s1390_s11 }
 0xb5e   :  { %v361_v20 = vpop.permute.xlu1 %360 }
 0xb5f   :  { %363 = vst.msk [vmem:[#allocation2 + $0x20] sm:$0xff] %vm33_vm4, %v361_v20  ;;  %1215 = vmatmul.msk.f32.vlgmr.msra.gmra.mxu1 %vm33_vm4, %v361_v20 }
 0xb60   :  { %860 = vmatpush.msra.mxu1 %v1550_v16 }
 0xb62   :  { %861 = vmatpush.msra.mxu1 %v1555_v17 }
 0xb64   :  { %862 = vmatpush.msra.mxu1 %v1562_v18 }
 0xb66   :  { %v566_v21 = vld [vmem:[#allocation2 + $0x20] sm:$0xff]  ;;  %863 = vmatpush.msra.mxu1 %v1569_v19 }
 0xb67   :  { %1225 = vmatmul.msk.f32.vlgmr.msra.gmra.mxu3 %vm33_vm4, %v566_v21  ;;  %672 = vmatmul.f32.vlgmr.msrb.gmra.mxu1 %v1388_v4  ;;  %v364_v4 = vld [vmem:[%s1720_s0 + $0x28] sm:$0xff] }
 0xb68   :  { %988 = vmatpush.msra.mxu3 %v1550_v16  ;;  %1052 = vmatpush.msrb.mxu1 %v1550_v16 }
 0xb6a   :  { %989 = vmatpush.msra.mxu3 %v1555_v17  ;;  %1053 = vmatpush.msrb.mxu1 %v1555_v17 }
 0xb6c   :  { %990 = vmatpush.msra.mxu3 %v1562_v18  ;;  %1054 = vmatpush.msrb.mxu1 %v1562_v18 }
 0xb6e   :  { %991 = vmatpush.msra.mxu3 %v1569_v19  ;;  %1055 = vmatpush.msrb.mxu1 %v1569_v19 }
 0xbdc   :  { %v384_v22 = vpop.f32.mrf.mxu1 }
 0xbdd   :  { %v387_v23 = vadd.f32 %v384_v22, %v364_v4 }
 0xbdf   :  { %1296 = vtanh.f32 %v387_v23  ;;  %v1216_v25 = vmul.f32 -1.442695, %v387_v23 }
 0xbe1   :  { %1298 = vpow2.f32 %v1216_v25 }
 0xbe4   :  { %v673_v45 = vpop.f32.mrf.mxu1 }
 0xbe5   :  { %v1297_v24 = vpop.eup %1296  ;;  %v676_v47 = vadd.f32 %v673_v45, %v620_v46 }
 0xbe6   :  { %410 = vrot.lane.b32.xlu2 %v1297_v24, %s1389_s10 }
 0xbe7   :  { %v1299_v26 = vpop.eup %1298  ;;  %v1229_v54 = vmul.f32 -1.442695, %v676_v47 }
 0xbe8   :  { %v391_v27 = vadd.f32 1.0, %v1299_v26 }
 0xbea   :  { %1300 = vrcp.f32 %v391_v27  ;;  %v403_v33 = vand.u32 2147483648, %v391_v27  ;;  %vm397_vm7 = vweird.f32 %v391_v27  ;;  %v401_v34 = vand.u32 2147483647, %v391_v27 }
 0xbec   :  { %v404_v36 = vor.u32 1.1754944e-38, %v403_v33  ;;  %vm402_vm9 = vcmp.eq.f32.partialorder %v401_v34, 8.507059e+37 }
 0xbf0   :  { %v1301_v28 = vpop.eup %1300 }
 0xbf1   :  { %v393_v29 = vmul.f32 %v1301_v28, %v391_v27  ;;  %vm398_vm6 = vweird.f32 %v1301_v28 }
 0xbf2   :  { %vm399_vm8 = vmor %vm397_vm7, %vm398_vm6 }
 0xbf3   :  { %v394_v30 = vsub.f32 1.0, %v393_v29 }
 0xbf5   :  { %v395_v31 = vmul.f32 %v1301_v28, %v394_v30 }
 0xbf7   :  { %v396_v32 = vadd.f32 %v1301_v28, %v395_v31 }
 0xbf9   :  { %v400_v35 = vsel %vm399_vm8, %v1301_v28, %v396_v32 }
 0xbfa   :  { %v405_v38 = vsel %vm402_vm9, %v404_v36, %v400_v35 }
 0xbfb   :  { %v408_v40 = vmul.f32 %v405_v38, %v1542_v12 }
 0xc40   :  { %v411_v37 = vpop.permute.xlu2 %410 }
 0xc41   :  { %v413_v39 = vmul.f32 %v411_v37, %v405_v38 }
 0xc43   :  { %415 = vrot.lane.b32.xlu0 %v413_v39, %s1390_s11 }
 0xcb5   :  { %v416_v41 = vpop.permute.xlu0 %415 }
 0xcb6   :  { %v1602_v43 = vadd.f32 %v416_v41, %v408_v40 }
 0xcb8   :  { %1302 = vtanh.f32 %v1602_v43 }
 0xcb9   :  { %1304 = vtanh.f32 %v676_v47  ;;  %v622_v47 = vpop.f32.mrf.mxu0 }
 0xcba   :  { %1306 = vpow2.f32 %v1229_v54 }
 0xcbe   :  { %v1303_v48 = vpop.eup %1302 }
 0xcbf   :  { %421 = vrot.lane.b32.xlu1 %v1303_v48, %s1389_s10  ;;  %v1305_v49 = vpop.eup %1304  ;;  %v623_v48 = vadd.f32 %v1600_v42, %v622_v47 }
 0xcc0   :  { %v1307_v55 = vpop.eup %1306 }
 0xcc1   :  { %v680_v56 = vadd.f32 1.0, %v1307_v55 }
 0xcc3   :  { %1308 = vrcp.f32 %v680_v56  ;;  %v692_v2 = vand.u32 2147483648, %v680_v56  ;;  %vm686_vm11 = vweird.f32 %v680_v56  ;;  %v690_v5 = vand.u32 2147483647, %v680_v56 }
 0xcc5   :  { %v693_v7 = vor.u32 1.1754944e-38, %v692_v2  ;;  %vm691_vm13 = vcmp.eq.f32.partialorder %v690_v5, 8.507059e+37 }
 0xcc7   :  { %699 = vrot.lane.b32.xlu1 %v1305_v49, %s1389_s10 }
 0xcc9   :  { %v1309_v57 = vpop.eup %1308 }
 0xcca   :  { %v682_v58 = vmul.f32 %v1309_v57, %v680_v56  ;;  %vm687_vm10 = vweird.f32 %v1309_v57 }
 0xccb   :  { %vm688_vm12 = vmor %vm686_vm11, %vm687_vm10 }
 0xccc   :  { %v683_v60 = vsub.f32 1.0, %v682_v58 }
 0xcce   :  { %v684_v63 = vmul.f32 %v1309_v57, %v683_v60 }
 0xcd0   :  { %v685_v0 = vadd.f32 %v1309_v57, %v684_v63 }
 0xcd2   :  { %v689_v3 = vsel %vm688_vm12, %v1309_v57, %v685_v0 }
 0xcd3   :  { %v694_v8 = vsel %vm691_vm13, %v693_v7, %v689_v3 }
 0xcd4   :  { %v697_v28 = vmul.f32 0.0, %v694_v8 }
 0xd31   :  { %v422_v50 = vpop.permute.xlu1 %421 }
 0xd32   :  { %v424_v51 = vmul.f32 %v422_v50, %v405_v38 }
 0xd34   :  { %426 = vrot.lane.b32.xlu2 %v424_v51, %s1390_s11 }
 0xd39   :  { %v700_v6 = vpop.permute.xlu1 %699 }
 0xd3a   :  { %v702_v9 = vmul.f32 %v700_v6, %v694_v8 }
 0xd8e   :  { %v427_v52 = vpop.permute.xlu2 %426 }
 0xd8f   :  { %429 = vst.msk [vmem:[#allocation2 + $0x28] sm:$0xff] %vm33_vm4, %v427_v52  ;;  %1217 = vmatmul.msk.f32.vlgmr.msrb.gmra.mxu2 %vm33_vm4, %v427_v52 }
 0xd90   :  { %732 = vmatpush.msrb.mxu2 %v1550_v16 }
 0xd92   :  { %733 = vmatpush.msrb.mxu2 %v1555_v17 }
 0xd94   :  { %734 = vmatpush.msrb.mxu2 %v1562_v18 }
 0xd96   :  { %v567_v53 = vld [vmem:[#allocation2 + $0x28] sm:$0xff]  ;;  %735 = vmatpush.msrb.mxu2 %v1569_v19 }
 0xd97   :  { %1226 = vmatmul.msk.f32.gmra.mxu3 %vm33_vm4, %v567_v53 }
 0xe12   :  { %v450_v61 = vpop.f32.mrf.mxu2 }
 0xe13   :  { %v453_v62 = vadd.f32 %v450_v61, %v430_v59 }
 0xe15   :  { %1310 = vtanh.f32 %v453_v62  ;;  %v1218_v10 = vmul.f32 -1.442695, %v453_v62 }
 0xe17   :  { %1312 = vpow2.f32 %v1218_v10 }
 0xe1b   :  { %v1311_v1 = vpop.eup %1310 }
 0xe1c   :  { %476 = vrot.lane.b32.xlu0 %v1311_v1, %s1389_s10 }
 0xe1d   :  { %v1313_v11 = vpop.eup %1312 }
 0xe1e   :  { %v457_v12 = vadd.f32 1.0, %v1313_v11 }
 0xe20   :  { %1314 = vrcp.f32 %v457_v12  ;;  %v469_v4 = vand.u32 2147483648, %v457_v12  ;;  %vm463_vm15 = vweird.f32 %v457_v12  ;;  %v467_v22 = vand.u32 2147483647, %v457_v12 }
 0xe22   :  { %v470_v24 = vor.u32 1.1754944e-38, %v469_v4  ;;  %vm468_vm1 = vcmp.eq.f32.partialorder %v467_v22, 8.507059e+37 }
 0xe24   :  { %704 = vrot.lane.b32.xlu0 %v702_v9, %s1390_s11 }
 0xe26   :  { %v1315_v13 = vpop.eup %1314 }
 0xe27   :  { %v459_v14 = vmul.f32 %v1315_v13, %v457_v12  ;;  %vm464_vm14 = vweird.f32 %v1315_v13 }
 0xe28   :  { %vm465_vm0 = vmor %vm463_vm15, %vm464_vm14 }
 0xe29   :  { %v460_v15 = vsub.f32 1.0, %v459_v14 }
 0xe2b   :  { %v461_v20 = vmul.f32 %v1315_v13, %v460_v15 }
 0xe2d   :  { %v462_v21 = vadd.f32 %v1315_v13, %v461_v20 }
 0xe2f   :  { %v466_v23 = vsel %vm465_vm0, %v1315_v13, %v462_v21 }
 0xe30   :  { %v471_v26 = vsel %vm468_vm1, %v470_v24, %v466_v23 }
 0xe31   :  { %v474_v32 = vmul.f32 %v471_v26, %v1602_v43 }
 0xe8e   :  { %v477_v25 = vpop.permute.xlu0 %476 }
 0xe8f   :  { %v479_v27 = vmul.f32 %v477_v25, %v471_v26 }
 0xe91   :  { %481 = vrot.lane.b32.xlu2 %v479_v27, %s1390_s11 }
 0xe96   :  { %v705_v29 = vpop.permute.xlu0 %704 }
 0xe97   :  { %v1622_v30 = vadd.f32 %v705_v29, %v697_v28 }
 0xe99   :  { %1316 = vtanh.f32 %v1622_v30 }
 0xe9f   :  { %v1317_v31 = vpop.eup %1316 }
 0xea0   :  { %710 = vrot.lane.b32.xlu2 %v1317_v31, %s1389_s10 }
 0xeeb   :  { %v482_v33 = vpop.permute.xlu2 %481 }
 0xeec   :  { %v1627_v34 = vadd.f32 %v482_v33, %v474_v32 }
 0xeee   :  { %1318 = vtanh.f32 %v1627_v34 }
 0xef4   :  { %v1319_v35 = vpop.eup %1318 }
 0xef5   :  { %487 = vrot.lane.b32.xlu1 %v1319_v35, %s1389_s10 }
 0xefa   :  { %v711_v36 = vpop.permute.xlu2 %710 }
 0xefb   :  { %v713_v37 = vmul.f32 %v711_v36, %v694_v8 }
 0xefd   :  { %716 = vrot.lane.b32.xlu1 %v713_v37, %s1390_s11 }
 0xf67   :  { %v488_v38 = vpop.permute.xlu1 %487 }
 0xf68   :  { %v490_v39 = vmul.f32 %v488_v38, %v471_v26  ;;  %v625_v38 = vpop.f32.mrf.mxu0 }
 0xf6a   :  { %492 = vrot.lane.b32.xlu0 %v490_v39, %s1390_s11  ;;  %v626_v39 = vadd.f32 %v1600_v42, %v625_v38 }
 0xf6f   :  { %v717_v41 = vpop.permute.xlu1 %716 }
 0xfdc   :  { %v493_v40 = vpop.permute.xlu0 %492 }
 0xfdd   :  { %495 = vst.msk [vmem:[#allocation2 + $0x30] sm:$0xff] %vm33_vm4, %v493_v40  ;;  %1219 = vmatmul.msk.f32.vlgmr.msra.gmra.mxu2 %vm33_vm4, %v493_v40 }
 0xfde   :  { %924 = vmatpush.msra.mxu2 %v1550_v16 }
 0xfe0   :  { %925 = vmatpush.msra.mxu2 %v1555_v17 }
 0xfe2   :  { %926 = vmatpush.msra.mxu2 %v1562_v18 }
 0xfe4   :  { %v568_v43 = vld [vmem:[#allocation2 + $0x30] sm:$0xff]  ;;  %927 = vmatpush.msra.mxu2 %v1569_v19 }
 0xfe5   :  { %1227 = vmatmul.msk.f32.gmra.mxu3 %vm33_vm4, %v568_v43  ;;  %1230 = vmatmul.msk.f32.vlgmr.msrb.gmra.mxu2 %vm33_vm4, %v717_v41 }
 0xfe6   :  { %1116 = vmatpush.msrb.mxu2 %v1550_v16 }
 0xfe8   :  { %1117 = vmatpush.msrb.mxu2 %v1555_v17 }
 0xfea   :  { %1118 = vmatpush.msrb.mxu2 %v1562_v18 }
 0xfec   :  { %1119 = vmatpush.msrb.mxu2 %v1569_v19 }
0x1060   :  { %v516_v45 = vpop.f32.mrf.mxu2 }
0x1061   :  { %v519_v46 = vadd.f32 %v516_v45, %v496_v44 }
0x1063   :  { %1320 = vtanh.f32 %v519_v46  ;;  %v1220_v17 = vmul.f32 -1.442695, %v519_v46 }
0x1068   :  { %v737_v49 = vpop.f32.mrf.mxu2 }
0x1069   :  { %v1321_v50 = vpop.eup %1320  ;;  %v740_v51 = vadd.f32 %v737_v49, %v623_v48 }
0x106a   :  { %542 = vrot.lane.b32.xlu2 %v1321_v50, %s1389_s10 }
0x106b   :  { %1322 = vtanh.f32 %v740_v51  ;;  %v1231_v55 = vmul.f32 -1.442695, %v740_v51 }
0x106c   :  { %1324 = vpow2.f32 %v1220_v17 }
0x1071   :  { %v1323_v16 = vpop.eup %1322 }
0x1072   :  { %763 = vrot.lane.b32.xlu0 %v1323_v16, %s1389_s10  ;;  %v1325_v18 = vpop.eup %1324 }
0x1073   :  { %v523_v19 = vadd.f32 1.0, %v1325_v18 }
0x1075   :  { %1326 = vrcp.f32 %v523_v19  ;;  %v535_v58 = vand.u32 2147483648, %v523_v19  ;;  %vm529_vm3 = vweird.f32 %v523_v19  ;;  %v533_v59 = vand.u32 2147483647, %v523_v19 }
0x1076   :  { %1328 = vpow2.f32 %v1231_v55 }
0x1077   :  { %v536_v62 = vor.u32 1.1754944e-38, %v535_v58  ;;  %vm534_vm6 = vcmp.eq.f32.partialorder %v533_v59, 8.507059e+37 }
0x107b   :  { %v1327_v52 = vpop.eup %1326 }
0x107c   :  { %v525_v53 = vmul.f32 %v1327_v52, %v523_v19  ;;  %vm530_vm2 = vweird.f32 %v1327_v52  ;;  %v1329_v60 = vpop.eup %1328 }
0x107d   :  { %vm531_vm5 = vmor %vm529_vm3, %vm530_vm2  ;;  %v744_v63 = vadd.f32 1.0, %v1329_v60 }
0x107e   :  { %v526_v54 = vsub.f32 1.0, %v525_v53 }
0x107f   :  { %1330 = vrcp.f32 %v744_v63  ;;  %v756_v9 = vand.u32 2147483648, %v744_v63  ;;  %vm750_vm8 = vweird.f32 %v744_v63  ;;  %v754_v10 = vand.u32 2147483647, %v744_v63 }
0x1080   :  { %v527_v56 = vmul.f32 %v1327_v52, %v526_v54 }
0x1081   :  { %v757_v12 = vor.u32 1.1754944e-38, %v756_v9  ;;  %vm755_vm10 = vcmp.eq.f32.partialorder %v754_v10, 8.507059e+37 }
0x1082   :  { %v528_v57 = vadd.f32 %v1327_v52, %v527_v56 }
0x1084   :  { %v532_v61 = vsel %vm531_vm5, %v1327_v52, %v528_v57 }
0x1085   :  { %v537_v0 = vsel %vm534_vm6, %v536_v62, %v532_v61  ;;  %v1331_v5 = vpop.eup %1330  ;;  %v628_v62 = vpop.f32.mrf.mxu0 }
0x1086   :  { %v746_v3 = vmul.f32 %v1331_v5, %v744_v63  ;;  %vm751_vm7 = vweird.f32 %v1331_v5  ;;  %v540_v20 = vmul.f32 %v537_v0, %v1627_v34  ;;  %v1662_v34 = vpop.f32.mrf.mxu3  ;;  %v629_v63 = vadd.f32 %v1600_v42, %v628_v62 }
0x1087   :  { %vm752_vm9 = vmor %vm750_vm8, %vm751_vm7 }
0x1088   :  { %v747_v6 = vsub.f32 1.0, %v746_v3 }
0x108a   :  { %v748_v7 = vmul.f32 %v1331_v5, %v747_v6 }
0x108c   :  { %v749_v8 = vadd.f32 %v1331_v5, %v748_v7 }
0x108e   :  { %v753_v11 = vsel %vm752_vm9, %v1331_v5, %v749_v8  ;;  %v1664_v35 = vpop.f32.mrf.mxu3 }
0x108f   :  { %v758_v14 = vsel %vm755_vm10, %v757_v12, %v753_v11 }
0x1090   :  { %v761_v22 = vmul.f32 %v758_v14, %v1622_v30 }
0x1096   :  { %v1666_v36 = vpop.f32.mrf.mxu3 }
0x10c4   :  { %v543_v1 = vpop.permute.xlu2 %542 }
0x10c5   :  { %v545_v2 = vmul.f32 %v543_v1, %v537_v0 }
0x10c7   :  { %547 = vrot.lane.b32.xlu1 %v545_v2, %s1390_s11 }
0x10e4   :  { %v764_v13 = vpop.permute.xlu0 %763 }
0x10e5   :  { %v766_v15 = vmul.f32 %v764_v13, %v758_v14 }
0x10e7   :  { %768 = vrot.lane.b32.xlu2 %v766_v15, %s1390_s11 }
0x1139   :  { %v548_v21 = vpop.permute.xlu1 %547 }
0x113a   :  { %v550_v4 = vadd.f32 %v548_v21, %v540_v20 }
0x113c   :  { %1332 = vtanh.f32 %v550_v4 }
0x1141   :  { %v769_v23 = vpop.permute.xlu2 %768 }
0x1142   :  { %v1333_v24 = vpop.eup %1332  ;;  %v771_v25 = vadd.f32 %v769_v23, %v761_v22 }
0x1143   :  { %553 = vrot.lane.b32.xlu0 %v1333_v24, %s1389_s10 }
0x1144   :  { %1334 = vtanh.f32 %v771_v25 }
0x114a   :  { %v1335_v26 = vpop.eup %1334 }
0x114b   :  { %774 = vrot.lane.b32.xlu1 %v1335_v26, %s1389_s10 }
0x11b5   :  { %v554_v27 = vpop.permute.xlu0 %553 }
0x11b6   :  { %v556_v28 = vmul.f32 %v554_v27, %v537_v0 }
0x11b8   :  { %558 = vrot.lane.b32.xlu2 %v556_v28, %s1390_s11 }
0x11bd   :  { %v775_v29 = vpop.permute.xlu1 %774 }
0x11be   :  { %v777_v31 = vmul.f32 %v775_v29, %v758_v14  ;;  %v632_v29 = vadd.f32 %v1600_v42, %v1662_v34 }
0x11c0   :  { %780 = vrot.lane.b32.xlu0 %v777_v31, %s1390_s11 }
0x1212   :  { %v559_v32 = vpop.permute.xlu2 %558 }
0x1213   :  { %561 = vst.msk [vmem:[#allocation2 + $0x38] sm:$0xff] %vm33_vm4, %v559_v32 }
0x121a   :  { %v569_v30 = vld [vmem:[#allocation2 + $0x38] sm:$0xff] }
0x121b   :  { %1228 = vmatmul.msk.f32.gmra.mxu3 %vm33_vm4, %v569_v30 }
0x1232   :  { %v781_v33 = vpop.permute.xlu0 %780 }
0x1233   :  { %1232 = vmatmul.msk.f32.vlgmr.msrb.gmra.mxu3 %vm33_vm4, %v781_v33 }
0x129e   :  { %v1668_v37 = vpop.f32.mrf.mxu3 }
0x12b6   :  { %v801_v40 = vpop.f32.mrf.mxu3 }
0x12b7   :  { %v804_v41 = vadd.f32 %v801_v40, %v626_v39 }
0x12b9   :  { %1336 = vtanh.f32 %v804_v41  ;;  %v1233_v44 = vmul.f32 -1.442695, %v804_v41 }
0x12bb   :  { %1338 = vpow2.f32 %v1233_v44 }
0x12bf   :  { %v1337_v43 = vpop.eup %1336 }
0x12c0   :  { %827 = vrot.lane.b32.xlu1 %v1337_v43, %s1389_s10 }
0x12c1   :  { %v1339_v45 = vpop.eup %1338 }
0x12c2   :  { %v808_v46 = vadd.f32 1.0, %v1339_v45 }
0x12c4   :  { %1340 = vrcp.f32 %v808_v46  ;;  %v820_v16 = vand.u32 2147483648, %v808_v46  ;;  %vm814_vm12 = vweird.f32 %v808_v46  ;;  %v818_v17 = vand.u32 2147483647, %v808_v46 }
0x12c6   :  { %v821_v19 = vor.u32 1.1754944e-38, %v820_v16  ;;  %vm819_vm14 = vcmp.eq.f32.partialorder %v818_v17, 8.507059e+37 }
0x12ca   :  { %v1341_v47 = vpop.eup %1340 }
0x12cb   :  { %v810_v48 = vmul.f32 %v1341_v47, %v808_v46  ;;  %vm815_vm11 = vweird.f32 %v1341_v47 }
0x12cc   :  { %vm816_vm13 = vmor %vm814_vm12, %vm815_vm11 }
0x12cd   :  { %v811_v49 = vsub.f32 1.0, %v810_v48 }
0x12cf   :  { %v812_v50 = vmul.f32 %v1341_v47, %v811_v49 }
0x12d1   :  { %v813_v51 = vadd.f32 %v1341_v47, %v812_v50 }
0x12d3   :  { %v817_v18 = vsel %vm816_vm13, %v1341_v47, %v813_v51 }
0x12d4   :  { %v822_v53 = vsel %vm819_vm14, %v821_v19, %v817_v18 }
0x12d5   :  { %v825_v55 = vmul.f32 %v822_v53, %v771_v25 }
0x1332   :  { %v828_v52 = vpop.permute.xlu1 %827 }
0x1333   :  { %v830_v54 = vmul.f32 %v828_v52, %v822_v53 }
0x1335   :  { %832 = vrot.lane.b32.xlu2 %v830_v54, %s1390_s11 }
0x138f   :  { %v833_v56 = vpop.permute.xlu2 %832 }
0x1390   :  { %v835_v57 = vadd.f32 %v833_v56, %v825_v55  ;;  %v635_v55 = vadd.f32 %v1600_v42, %v1664_v35 }
0x1392   :  { %1342 = vtanh.f32 %v835_v57 }
0x1398   :  { %v1343_v58 = vpop.eup %1342 }
0x1399   :  { %838 = vrot.lane.b32.xlu0 %v1343_v58, %s1389_s10 }
0x140b   :  { %v839_v59 = vpop.permute.xlu0 %838 }
0x140c   :  { %v841_v60 = vmul.f32 %v839_v59, %v822_v53 }
0x140e   :  { %844 = vrot.lane.b32.xlu1 %v841_v60, %s1390_s11 }
0x1480   :  { %v845_v61 = vpop.permute.xlu1 %844 }
0x1481   :  { %1234 = vmatmul.msk.f32.vlgmr.msra.gmra.mxu1 %vm33_vm4, %v845_v61 }
0x14fe   :  { %v865_v0 = vpop.f32.mrf.mxu1 }
0x14ff   :  { %v868_v1 = vadd.f32 %v865_v0, %v629_v63 }
0x1501   :  { %1344 = vtanh.f32 %v868_v1  ;;  %v1235_v5 = vmul.f32 -1.442695, %v868_v1 }
0x1503   :  { %1346 = vpow2.f32 %v1235_v5 }
0x1507   :  { %v1345_v2 = vpop.eup %1344 }
0x1508   :  { %891 = vrot.lane.b32.xlu2 %v1345_v2, %s1389_s10 }
0x1509   :  { %v1347_v3 = vpop.eup %1346 }
0x150a   :  { %v872_v6 = vadd.f32 1.0, %v1347_v3 }
0x150c   :  { %1348 = vrcp.f32 %v872_v6  ;;  %v884_v12 = vand.u32 2147483648, %v872_v6  ;;  %vm878_vm0 = vweird.f32 %v872_v6  ;;  %v882_v13 = vand.u32 2147483647, %v872_v6 }
0x150e   :  { %v885_v15 = vor.u32 1.1754944e-38, %v884_v12  ;;  %vm883_vm2 = vcmp.eq.f32.partialorder %v882_v13, 8.507059e+37 }
0x1512   :  { %v1349_v7 = vpop.eup %1348 }
0x1513   :  { %v874_v8 = vmul.f32 %v1349_v7, %v872_v6  ;;  %vm879_vm15 = vweird.f32 %v1349_v7 }
0x1514   :  { %vm880_vm1 = vmor %vm878_vm0, %vm879_vm15 }
0x1515   :  { %v875_v9 = vsub.f32 1.0, %v874_v8 }
0x1517   :  { %v876_v10 = vmul.f32 %v1349_v7, %v875_v9 }
0x1519   :  { %v877_v11 = vadd.f32 %v1349_v7, %v876_v10 }
0x151b   :  { %v881_v14 = vsel %vm880_vm1, %v1349_v7, %v877_v11 }
0x151c   :  { %v886_v21 = vsel %vm883_vm2, %v885_v15, %v881_v14 }
0x151d   :  { %v889_v22 = vmul.f32 %v886_v21, %v835_v57 }
0x1562   :  { %v892_v20 = vpop.permute.xlu2 %891 }
0x1563   :  { %v894_v4 = vmul.f32 %v892_v20, %v886_v21 }
0x1565   :  { %896 = vrot.lane.b32.xlu0 %v894_v4, %s1390_s11 }
0x15d7   :  { %v897_v23 = vpop.permute.xlu0 %896 }
0x15d8   :  { %v899_v24 = vadd.f32 %v897_v23, %v889_v22 }
0x15da   :  { %1350 = vtanh.f32 %v899_v24 }
0x15e0   :  { %v1351_v25 = vpop.eup %1350 }
0x15e1   :  { %902 = vrot.lane.b32.xlu1 %v1351_v25, %s1389_s10 }
0x1653   :  { %v903_v26 = vpop.permute.xlu1 %902 }
0x1654   :  { %v905_v27 = vmul.f32 %v903_v26, %v886_v21  ;;  %v638_v21 = vadd.f32 %v1600_v42, %v1666_v36 }
0x1656   :  { %908 = vrot.lane.b32.xlu2 %v905_v27, %s1390_s11 }
0x16b0   :  { %v909_v28 = vpop.permute.xlu2 %908 }
0x16b1   :  { %1236 = vmatmul.msk.f32.vlgmr.msra.gmra.mxu2 %vm33_vm4, %v909_v28 }
0x1734   :  { %v929_v31 = vpop.f32.mrf.mxu2 }
0x1735   :  { %v932_v32 = vadd.f32 %v929_v31, %v632_v29 }
0x1737   :  { %1352 = vtanh.f32 %v932_v32  ;;  %v1237_v33 = vmul.f32 -1.442695, %v932_v32 }
0x1739   :  { %1354 = vpow2.f32 %v1237_v33 }
0x173d   :  { %v1353_v30 = vpop.eup %1352 }
0x173e   :  { %955 = vrot.lane.b32.xlu0 %v1353_v30, %s1389_s10 }
0x173f   :  { %v1355_v38 = vpop.eup %1354 }
0x1740   :  { %v936_v39 = vadd.f32 1.0, %v1355_v38 }
0x1742   :  { %1356 = vrcp.f32 %v936_v39  ;;  %v948_v46 = vand.u32 2147483648, %v936_v39  ;;  %vm942_vm5 = vweird.f32 %v936_v39  ;;  %v946_v34 = vand.u32 2147483647, %v936_v39 }
0x1744   :  { %v949_v48 = vor.u32 1.1754944e-38, %v948_v46  ;;  %vm947_vm7 = vcmp.eq.f32.partialorder %v946_v34, 8.507059e+37 }
0x1748   :  { %v1357_v40 = vpop.eup %1356 }
0x1749   :  { %v938_v41 = vmul.f32 %v1357_v40, %v936_v39  ;;  %vm943_vm3 = vweird.f32 %v1357_v40 }
0x174a   :  { %vm944_vm6 = vmor %vm942_vm5, %vm943_vm3 }
0x174b   :  { %v939_v43 = vsub.f32 1.0, %v938_v41 }
0x174d   :  { %v940_v44 = vmul.f32 %v1357_v40, %v939_v43 }
0x174f   :  { %v941_v45 = vadd.f32 %v1357_v40, %v940_v44 }
0x1751   :  { %v945_v47 = vsel %vm944_vm6, %v1357_v40, %v941_v45 }
0x1752   :  { %v950_v50 = vsel %vm947_vm7, %v949_v48, %v945_v47  ;;  %vm1200_vm7 = vcmask 7168  }
0x1753   :  { %v953_v16 = vmul.f32 %v950_v50, %v899_v24 }
0x17b0   :  { %v956_v49 = vpop.permute.xlu0 %955 }
0x17b1   :  { %v958_v51 = vmul.f32 %v956_v49, %v950_v50  ;;  %v641_v49 = vadd.f32 %v1600_v42, %v1668_v37 }
0x17b3   :  { %960 = vrot.lane.b32.xlu1 %v958_v51, %s1390_s11 }
0x1825   :  { %v961_v17 = vpop.permute.xlu1 %960 }
0x1826   :  { %v963_v18 = vadd.f32 %v961_v17, %v953_v16 }
0x1828   :  { %1358 = vtanh.f32 %v963_v18 }
0x182e   :  { %v1359_v19 = vpop.eup %1358 }
0x182f   :  { %966 = vrot.lane.b32.xlu2 %v1359_v19, %s1389_s10 }
0x1889   :  { %v967_v52 = vpop.permute.xlu2 %966 }
0x188a   :  { %v969_v53 = vmul.f32 %v967_v52, %v950_v50  ;;  %v1254_v52 = vld [vmem:[%s1724_s5] ss:$0 sm:$0xff] }
0x188c   :  { %972 = vrot.lane.b32.xlu0 %v969_v53, %s1390_s11 }
0x18fe   :  { %v973_v54 = vpop.permute.xlu0 %972 }
0x18ff   :  { %1238 = vmatmul.msk.f32.vlgmr.msra.gmra.mxu3 %vm33_vm4, %v973_v54 }
0x1982   :  { %v993_v56 = vpop.f32.mrf.mxu3 }
0x1983   :  { %v996_v57 = vadd.f32 %v993_v56, %v635_v55 }
0x1985   :  { %1360 = vtanh.f32 %v996_v57  ;;  %v1239_v59 = vmul.f32 -1.442695, %v996_v57 }
0x1987   :  { %1362 = vpow2.f32 %v1239_v59 }
0x198b   :  { %v1361_v58 = vpop.eup %1360 }
0x198c   :  { %1019 = vrot.lane.b32.xlu1 %v1361_v58, %s1389_s10 }
0x198d   :  { %v1363_v60 = vpop.eup %1362 }
0x198e   :  { %v1000_v61 = vadd.f32 1.0, %v1363_v60 }
0x1990   :  { %1364 = vrcp.f32 %v1000_v61  ;;  %v1012_v5 = vand.u32 2147483648, %v1000_v61  ;;  %vm1006_vm9 = vweird.f32 %v1000_v61  ;;  %v1010_v35 = vand.u32 2147483647, %v1000_v61 }
0x1992   :  { %v1013_v6 = vor.u32 1.1754944e-38, %v1012_v5  ;;  %vm1011_vm11 = vcmp.eq.f32.partialorder %v1010_v35, 8.507059e+37 }
0x1996   :  { %v1365_v62 = vpop.eup %1364 }
0x1997   :  { %v1002_v63 = vmul.f32 %v1365_v62, %v1000_v61  ;;  %vm1007_vm8 = vweird.f32 %v1365_v62 }
0x1998   :  { %vm1008_vm10 = vmor %vm1006_vm9, %vm1007_vm8 }
0x1999   :  { %v1003_v0 = vsub.f32 1.0, %v1002_v63 }
0x199b   :  { %v1004_v1 = vmul.f32 %v1365_v62, %v1003_v0 }
0x199d   :  { %v1005_v2 = vadd.f32 %v1365_v62, %v1004_v1 }
0x199f   :  { %v1009_v3 = vsel %vm1008_vm10, %v1365_v62, %v1005_v2 }
0x19a0   :  { %v1014_v8 = vsel %vm1011_vm11, %v1013_v6, %v1009_v3 }
0x19a1   :  { %v1017_v10 = vmul.f32 %v1014_v8, %v963_v18 }
0x19fe   :  { %v1020_v7 = vpop.permute.xlu1 %1019 }
0x19ff   :  { %v1022_v9 = vmul.f32 %v1020_v7, %v1014_v8  ;;  %v12_v7 = vstv %s1725_s6 }
0x1a00   :  { %13 = vst [vmem:[#allocation4] sm:$0x1] %v12_v7 }
0x1a01   :  { %1024 = vrot.lane.b32.xlu2 %v1022_v9, %s1390_s11 }
0x1a5b   :  { %v1025_v11 = vpop.permute.xlu2 %1024 }
0x1a5c   :  { %v1027_v12 = vadd.f32 %v1025_v11, %v1017_v10  ;;  %v1255_v10 = vld [vmem:[#allocation4] ss:$0 sm:$0xff] }
0x1a5e   :  { %1366 = vtanh.f32 %v1027_v12 }
0x1a64   :  { %v1367_v13 = vpop.eup %1366 }
0x1a65   :  { %1030 = vrot.lane.b32.xlu0 %v1367_v13, %s1389_s10 }
0x1ad7   :  { %v1031_v14 = vpop.permute.xlu0 %1030 }
0x1ad8   :  { %v1033_v15 = vmul.f32 %v1031_v14, %v1014_v8 }
0x1ada   :  { %1036 = vrot.lane.b32.xlu1 %v1033_v15, %s1390_s11 }
0x1b4c   :  { %v1037_v20 = vpop.permute.xlu1 %1036 }
0x1b4d   :  { %1240 = vmatmul.msk.f32.vlgmr.msrb.gmra.mxu1 %vm33_vm4, %v1037_v20 }
0x1bca   :  { %v1057_v4 = vpop.f32.mrf.mxu1 }
0x1bcb   :  { %v1060_v22 = vadd.f32 %v1057_v4, %v638_v21 }
0x1bcd   :  { %1368 = vtanh.f32 %v1060_v22  ;;  %v1241_v24 = vmul.f32 -1.442695, %v1060_v22 }
0x1bcf   :  { %1370 = vpow2.f32 %v1241_v24 }
0x1bd3   :  { %v1369_v23 = vpop.eup %1368 }
0x1bd4   :  { %1083 = vrot.lane.b32.xlu2 %v1369_v23, %s1389_s10 }
0x1bd5   :  { %v1371_v25 = vpop.eup %1370 }
0x1bd6   :  { %v1064_v26 = vadd.f32 1.0, %v1371_v25 }
0x1bd8   :  { %1372 = vrcp.f32 %v1064_v26  ;;  %v1076_v30 = vand.u32 2147483648, %v1064_v26  ;;  %vm1070_vm13 = vweird.f32 %v1064_v26  ;;  %v1074_v36 = vand.u32 2147483647, %v1064_v26 }
0x1bda   :  { %v1077_v38 = vor.u32 1.1754944e-38, %v1076_v30  ;;  %vm1075_vm15 = vcmp.eq.f32.partialorder %v1074_v36, 8.507059e+37 }
0x1bde   :  { %v1373_v27 = vpop.eup %1372 }
0x1bdf   :  { %v1066_v28 = vmul.f32 %v1373_v27, %v1064_v26  ;;  %vm1071_vm12 = vweird.f32 %v1373_v27 }
0x1be0   :  { %vm1072_vm14 = vmor %vm1070_vm13, %vm1071_vm12 }
0x1be1   :  { %v1067_v29 = vsub.f32 1.0, %v1066_v28 }
0x1be3   :  { %v1068_v31 = vmul.f32 %v1373_v27, %v1067_v29 }
0x1be5   :  { %v1069_v32 = vadd.f32 %v1373_v27, %v1068_v31 }
0x1be7   :  { %v1073_v33 = vsel %vm1072_vm14, %v1373_v27, %v1069_v32 }
0x1be8   :  { %v1078_v40 = vsel %vm1075_vm15, %v1077_v38, %v1073_v33 }
0x1be9   :  { %v1081_v43 = vmul.f32 %v1078_v40, %v1027_v12 }
0x1c2e   :  { %v1084_v39 = vpop.permute.xlu2 %1083 }
0x1c2f   :  { %v1086_v41 = vmul.f32 %v1084_v39, %v1078_v40 }
0x1c31   :  { %1088 = vrot.lane.b32.xlu0 %v1086_v41, %s1390_s11 }
0x1ca3   :  { %v1089_v44 = vpop.permute.xlu0 %1088 }
0x1ca4   :  { %v1091_v45 = vadd.f32 %v1089_v44, %v1081_v43 }
0x1ca6   :  { %1374 = vtanh.f32 %v1091_v45 }
0x1cac   :  { %v1375_v46 = vpop.eup %1374 }
0x1cad   :  { %1094 = vrot.lane.b32.xlu1 %v1375_v46, %s1389_s10 }
0x1d1f   :  { %v1095_v34 = vpop.permute.xlu1 %1094 }
0x1d20   :  { %v1097_v47 = vmul.f32 %v1095_v34, %v1078_v40 }
0x1d22   :  { %1100 = vrot.lane.b32.xlu2 %v1097_v47, %s1390_s11 }
0x1d7c   :  { %v1101_v48 = vpop.permute.xlu2 %1100 }
0x1d7d   :  { %1242 = vmatmul.msk.f32.vlgmr.msrb.gmra.mxu2 %vm33_vm4, %v1101_v48 }
0x1e00   :  { %v1121_v50 = vpop.f32.mrf.mxu2 }
0x1e01   :  { %v1124_v51 = vadd.f32 %v1121_v50, %v641_v49 }
0x1e03   :  { %1376 = vtanh.f32 %v1124_v51  ;;  %v1243_v17 = vmul.f32 -1.442695, %v1124_v51 }
0x1e05   :  { %1378 = vpow2.f32 %v1243_v17 }
0x1e09   :  { %v1377_v16 = vpop.eup %1376 }
0x1e0a   :  { %1147 = vrot.lane.b32.xlu0 %v1377_v16, %s1389_s10 }
0x1e0b   :  { %v1379_v18 = vpop.eup %1378 }
0x1e0c   :  { %v1128_v19 = vadd.f32 1.0, %v1379_v18 }
0x1e0e   :  { %1380 = vrcp.f32 %v1128_v19  ;;  %v1140_v56 = vand.u32 2147483648, %v1128_v19  ;;  %vm1134_vm1 = vweird.f32 %v1128_v19  ;;  %v1138_v57 = vand.u32 2147483647, %v1128_v19 }
0x1e10   :  { %v1141_v59 = vor.u32 1.1754944e-38, %v1140_v56  ;;  %vm1139_vm3 = vcmp.eq.f32.partialorder %v1138_v57, 8.507059e+37 }
0x1e12   :  { %1165 = vrot.lane.b32.xlu0 %v1254_v52, %s1391_s20 }
0x1e14   :  { %v1381_v53 = vpop.eup %1380 }
0x1e15   :  { %v1130_v54 = vmul.f32 %v1381_v53, %v1128_v19  ;;  %vm1135_vm0 = vweird.f32 %v1381_v53 }
0x1e16   :  { %vm1136_vm2 = vmor %vm1134_vm1, %vm1135_vm0 }
0x1e17   :  { %v1131_v42 = vsub.f32 1.0, %v1130_v54 }
0x1e19   :  { %v1132_v37 = vmul.f32 %v1381_v53, %v1131_v42 }
0x1e1b   :  { %v1133_v55 = vadd.f32 %v1381_v53, %v1132_v37 }
0x1e1d   :  { %v1137_v58 = vsel %vm1136_vm2, %v1381_v53, %v1133_v55 }
0x1e1e   :  { %v1142_v61 = vsel %vm1139_vm3, %v1141_v59, %v1137_v58 }
0x1e1f   :  { %v1145_v63 = vmul.f32 %v1142_v61, %v1091_v45 }
0x1e7c   :  { %v1148_v60 = vpop.permute.xlu0 %1147 }
0x1e7d   :  { %v1150_v62 = vmul.f32 %v1148_v60, %v1142_v61 }
0x1e7f   :  { %1152 = vrot.lane.b32.xlu1 %v1150_v62, %s1390_s11 }
0x1e84   :  { %v1166_v35 = vpop.permute.xlu0 %1165 }
0x1ef1   :  { %v1153_v0 = vpop.permute.xlu1 %1152 }
0x1ef2   :  { %v1155_v1 = vadd.f32 %v1153_v0, %v1145_v63 }
0x1ef4   :  { %1382 = vtanh.f32 %v1155_v1 }
0x1efa   :  { %v1383_v2 = vpop.eup %1382 }
0x1efb   :  { %1158 = vrot.lane.b32.xlu2 %v1383_v2, %s1389_s10 }
0x1f55   :  { %v1159_v5 = vpop.permute.xlu2 %1158 }
0x1f56   :  { %v1161_v3 = vmul.f32 %v1159_v5, %v1142_v61 }
0x1f58   :  { %v1168_v6 = vmul.f32 %v1166_v35, %v1161_v3 }
0x1f5a   :  { %1170 = vrot.lane.b32.xlu1 %v1168_v6, %s1390_s11 }
0x1fcc   :  { %v1171_v8 = vpop.permute.xlu1 %1170 }
0x1fcd   :  { %v1173_v9 = vsel %vm33_vm4, %v1171_v8, 0.0 }
0x1fce   :  { %1174 = vadd.xlane.f32.xlu2 %v1173_v9 }
0x2041   :  { %v1175_v11 = vpop.xlane.xlu2 %1174 }
0x2042   :  { %v1180_v12 = vadd.f32 %v1255_v10, %v1175_v11 }
0x2044   :  { %v1244_v13 = vmul.f32 -1.442695, %v1180_v12 }
0x2046   :  { %1384 = vpow2.f32 %v1244_v13 }
0x204c   :  { %v1385_v14 = vpop.eup %1384 }
0x204d   :  { %v1184_v15 = vadd.f32 1.0, %v1385_v14 }
0x204f   :  { %1386 = vrcp.f32 %v1184_v15  ;;  %v1196_v22 = vand.u32 2147483648, %v1184_v15  ;;  %v1194_v24 = vand.u32 2147483647, %v1184_v15  ;;  %vm1190_vm6 = vweird.f32 %v1184_v15 }
0x2051   :  { %v1197_v26 = vor.u32 1.1754944e-38, %v1196_v22  ;;  %vm1195_vm8 = vcmp.eq.f32.partialorder %v1194_v24, 8.507059e+37 }
0x2055   :  { %v1387_v20 = vpop.eup %1386 }
0x2056   :  { %v1186_v21 = vmul.f32 %v1387_v20, %v1184_v15  ;;  %vm1191_vm5 = vweird.f32 %v1387_v20 }
0x2057   :  { %vm1192_vm4 = vmor %vm1190_vm6, %vm1191_vm5 }
0x2058   :  { %v1187_v4 = vsub.f32 1.0, %v1186_v21 }
0x205a   :  { %v1188_v23 = vmul.f32 %v1387_v20, %v1187_v4 }
0x205c   :  { %v1189_v25 = vadd.f32 %v1387_v20, %v1188_v23 }
0x205e   :  { %v1193_v27 = vsel %vm1192_vm4, %v1387_v20, %v1189_v25 }
0x205f   :  { %v1198_v28 = vsel %vm1195_vm8, %v1197_v26, %v1193_v27 }
0x2060   :  { %1201 = vst.msk [vmem:[%s1726_s7] sm:$0xff] %vm1200_vm7, %v1198_v28 }

</bundles_post_ra>
